<compile_context>
chip_gen: v5e
topology: v5e:2x2
jax: 0.10.0
libtpu: 0.0.40
codegen_flags: <defaults>
</compile_context>

<pallas_src>
import functools

import jax
import jax.numpy as jnp
from jax.experimental import pallas as pl
from jax.experimental.pallas import tpu as pltpu

HIDDEN = 768
EPS = 1e-12


def _bert_self_output_kernel(h_ref, wt_ref, x_ref, p_ref, o_ref):
    # h_ref : (TM, H) hidden_states tile (any float dtype; cast to bf16 for MXU)
    # wt_ref: (H, H)  dense weight, pre-transposed to (in, out), bf16, grid-invariant
    # x_ref : (TM, H) residual input_tensor tile
    # p_ref : (3, H)  packed params: row 0 = dense bias, 1 = LN weight, 2 = LN bias (f32)
    # o_ref : (TM, H) output tile (dtype = hidden_states dtype)
    h = h_ref[...].astype(jnp.bfloat16)  # no-op when activations are streamed as bf16

    # MXU-native [M,K] x [K,N] matmul with f32 accumulation.
    y = jnp.dot(h, wt_ref[...], preferred_element_type=jnp.float32)

    b = p_ref[0:1, :]
    g = p_ref[1:2, :]
    beta = p_ref[2:3, :]

    # TODO(synk): dropout(p=0.1) omitted — eval-mode identity; kernel is inference-only.

    # Bias + residual add, all statistics in f32.
    z = y + b + x_ref[...].astype(jnp.float32)

    # BertLayerNorm (TF-style, eps inside the sqrt). Two-pass, per-row, f32.
    u = jnp.mean(z, axis=-1, keepdims=True)
    d = z - u
    s = jnp.mean(d * d, axis=-1, keepdims=True)
    zn = d * jax.lax.rsqrt(s + EPS)

    o_ref[...] = (g * zn + beta).astype(o_ref.dtype)


def _round_up(x, m):
    return ((x + m - 1) // m) * m


def _preferred_tile_m():
    # v7x: bigger tiles amortize the fixed per-step pipeline overhead against
    # its 3.2 TB/s per-TC HBM.  v5e/v6e are already near roofline at 512.
    try:
        kind = jax.devices()[0].device_kind.lower()
    except Exception:
        kind = ""
    return 1024 if "7" in kind else 512


def _choose_tile_m(m_rows, preferred):
    # Never request a block taller than M rounded up to a sublane multiple.
    tm = min(preferred, _round_up(m_rows, 8))
    # Prefer >= 2 grid steps when there is enough work so v7x megacore
    # sharding (dimension_semantics=("parallel",)) keeps both TCs busy.
    if m_rows > 8 and pl.cdiv(m_rows, tm) < 2:
        tm = max(8, _round_up(pl.cdiv(m_rows, 2), 8))
    return tm


@functools.partial(jax.jit, static_argnames=("tile_m",))
def _bert_self_output_jit(hidden_states, input_tensor, dense_w, dense_b,
                          ln_w, ln_b, *, tile_m):
    B, S, H = hidden_states.shape
    M = B * S

    h2 = hidden_states.reshape(M, H)   # contiguous reshape: no HBM pass
    x2 = input_tensor.reshape(M, H)

    # One-time (1.1 MiB) transpose + cast to MXU-native (in, out) bf16 layout.
    # (In a full model, hoist this out of the per-layer call.)
    w_t = dense_w.T.astype(jnp.bfloat16)
    # Pack the three (H,) vectors into one (3, H) operand -> one DMA / one buffer.
    params = jnp.stack([dense_b, ln_w, ln_b], axis=0).astype(jnp.float32)

    grid_m = pl.cdiv(M, tile_m)

    out = pl.pallas_call(
        _bert_self_output_kernel,
        out_shape=jax.ShapeDtypeStruct((M, H), hidden_states.dtype),
        grid_spec=pltpu.PrefetchScalarGridSpec(
            num_scalar_prefetch=0,
            grid=(grid_m,),
            in_specs=[
                pl.BlockSpec((tile_m, H), lambda i: (i, 0)),  # hidden_states tile
                pl.BlockSpec((H, H), lambda i: (0, 0)),       # weight (grid-invariant)
                pl.BlockSpec((tile_m, H), lambda i: (i, 0)),  # residual tile
                pl.BlockSpec((3, H), lambda i: (0, 0)),       # packed bias/LN params
            ],
            out_specs=pl.BlockSpec((tile_m, H), lambda i: (i, 0)),
        ),
        compiler_params=pltpu.CompilerParams(
            dimension_semantics=("parallel",),        # shard M across TCs on v7x
            vmem_limit_bytes=48 * 1024 * 1024,        # safe on all generations, fits tile_m=1024 f32
        ),
    )(h2, w_t, x2, params)

    return out.reshape(B, S, H)


def bert_self_output(hidden_states, input_tensor, dense_w, dense_b, ln_w, ln_b,
                     *, tile_m=None):
    """hidden_states, input_tensor: [B, S, H] (f32 or bf16 — streamed as-is).
    dense_w: [H_out, H_in] (PyTorch nn.Linear layout)."""
    B, S, H = hidden_states.shape
    assert H == HIDDEN
    if tile_m is None:
        tile_m = _choose_tile_m(B * S, _preferred_tile_m())
    assert tile_m % 8 == 0
    return _bert_self_output_jit(hidden_states, input_tensor, dense_w, dense_b,
                                 ln_w, ln_b, tile_m=tile_m)


# ----------------------------- references -----------------------------------

def _reference_f32(hidden_states, input_tensor, dense_w, dense_b, ln_w, ln_b):
    hs = hidden_states.astype(jnp.float32)
    x = input_tensor.astype(jnp.float32)
    y = jnp.einsum("bsh,oh->bso", hs, dense_w.astype(jnp.float32)) + dense_b
    z = y + x
    u = jnp.mean(z, axis=-1, keepdims=True)
    s = jnp.mean((z - u) ** 2, axis=-1, keepdims=True)
    zn = (z - u) / jnp.sqrt(s + EPS)
    return ln_w * zn + ln_b


def _reference_matched(hidden_states, input_tensor, dense_w, dense_b, ln_w, ln_b):
    # Precision-matched: bf16 matmul operands, f32 accumulation, f32 LN.
    y = jnp.einsum("bsh,ho->bso",
                   hidden_states.astype(jnp.bfloat16),
                   dense_w.T.astype(jnp.bfloat16),
                   preferred_element_type=jnp.float32)
    z = y + dense_b + input_tensor.astype(jnp.float32)
    u = jnp.mean(z, axis=-1, keepdims=True)
    s = jnp.mean((z - u) ** 2, axis=-1, keepdims=True)
    zn = (z - u) / jnp.sqrt(s + EPS)
    return ln_w * zn + ln_b


if __name__ == "__main__":
    key = jax.random.PRNGKey(0)
    kh, kx, kw, kb = jax.random.split(key, 4)

    B, S, H = 2, 8, HIDDEN
    hidden_states = jax.random.normal(kh, (B, S, H), dtype=jnp.float32)
    input_tensor = jax.random.normal(kx, (B, S, H), dtype=jnp.float32)

    bound = 1.0 / (H ** 0.5)
    dense_w = jax.random.uniform(kw, (H, H), minval=-bound, maxval=bound,
                                 dtype=jnp.float32)      # (out, in) PyTorch layout
    dense_b = jax.random.uniform(kb, (H,), minval=-bound, maxval=bound,
                                 dtype=jnp.float32)
    ln_w = jnp.ones((H,), dtype=jnp.float32)
    ln_b = jnp.zeros((H,), dtype=jnp.float32)

    # --- f32-streamed run (matches the PyTorch module dtype) -----------------
    out = jax.block_until_ready(
        bert_self_output(hidden_states, input_tensor, dense_w, dense_b, ln_w, ln_b))
    assert out.shape == (B, S, H) and out.dtype == jnp.float32

    ref_pm = _reference_matched(hidden_states, input_tensor, dense_w, dense_b, ln_w, ln_b)
    assert jnp.allclose(out, ref_pm, atol=1e-3, rtol=1e-3), \
        "mismatch vs precision-matched reference"
    ref_f32 = _reference_f32(hidden_states, input_tensor, dense_w, dense_b, ln_w, ln_b)
    assert jnp.allclose(out, ref_f32, atol=2e-2, rtol=2e-2), \
        "mismatch vs f32 reference (bf16 matmul rounding is the only delta)"

    # --- bf16-streamed run (halved activation HBM traffic path) --------------
    hs_bf = hidden_states.astype(jnp.bfloat16)
    it_bf = input_tensor.astype(jnp.bfloat16)
    out_bf = jax.block_until_ready(
        bert_self_output(hs_bf, it_bf, dense_w, dense_b, ln_w, ln_b))
    assert out_bf.shape == (B, S, H) and out_bf.dtype == jnp.bfloat16
    ref_bf = _reference_matched(hs_bf, it_bf, dense_w, dense_b, ln_w, ln_b)
    assert jnp.allclose(out_bf.astype(jnp.float32), ref_bf, atol=2e-2, rtol=2e-2), \
        "mismatch vs precision-matched bf16 reference"

    # --- ragged-M run: no wrapper pad/slice; exercises the partial last block -
    hs_r = hidden_states.reshape(1, B * S, H)[:, :13]
    it_r = input_tensor.reshape(1, B * S, H)[:, :13]
    out_r = jax.block_until_ready(
        bert_self_output(hs_r, it_r, dense_w, dense_b, ln_w, ln_b))
    assert out_r.shape == (1, 13, H)
    ref_r = _reference_matched(hs_r, it_r, dense_w, dense_b, ln_w, ln_b)
    assert jnp.allclose(out_r, ref_r, atol=1e-3, rtol=1e-3), \
        "mismatch on ragged-M (boundary block) shape"

    print("KERNEL_OK")
</pallas_src>

<mosaic_0001>
module attributes {stable_mosaic.version = 11 : i64} {
  func.func @_bert_self_output_kernel(%arg0: i32, %arg1: memref<8x768xf32, #tpu.memory_space<vmem>>, %arg2: memref<768x768xbf16, #tpu.memory_space<vmem>>, %arg3: memref<8x768xf32, #tpu.memory_space<vmem>>, %arg4: memref<3x768xf32, #tpu.memory_space<vmem>>, %arg5: memref<8x768xf32, #tpu.memory_space<vmem>>) attributes {dimension_semantics = [#tpu.dimension_semantics<parallel>], iteration_bounds = array<i64: 2>, scalar_prefetch = 0 : i64, scratch_operands = 0 : i64, tpu.core_type = #tpu.core_type<tc>, window_params = [{transform_indices = @transform_0, window_bounds = array<i64: 8, 768>}, {pipeline_mode = #tpu.pipeline_mode<synchronous>, transform_indices = @transform_1, window_bounds = array<i64: 768, 768>}, {transform_indices = @transform_2, window_bounds = array<i64: 8, 768>}, {pipeline_mode = #tpu.pipeline_mode<synchronous>, transform_indices = @transform_3, window_bounds = array<i64: 3, 768>}, {transform_indices = @transform_4, window_bounds = array<i64: 8, 768>}]} {
    %c0 = arith.constant 0 : index
    %c0_0 = arith.constant 0 : index
    %0 = vector.load %arg1[%c0, %c0_0] : memref<8x768xf32, #tpu.memory_space<vmem>>, vector<8x768xf32>
    %1 = arith.truncf %0 : vector<8x768xf32> to vector<8x768xbf16>
    %c0_1 = arith.constant 0 : index
    %c0_2 = arith.constant 0 : index
    %2 = vector.load %arg2[%c0_1, %c0_2] : memref<768x768xbf16, #tpu.memory_space<vmem>>, vector<768x768xbf16>
    %cst = arith.constant dense<0.000000e+00> : vector<8x768xf32>
    %3 = tpu.matmul %1, %2, %cst {dimension_numbers = #tpu.dot_dimension_numbers<[1], [0], [0], [1], [0, 0, 1, 1], [], []>} : vector<8x768xbf16>, vector<768x768xbf16>, vector<8x768xf32> -> vector<8x768xf32>
    %c0_3 = arith.constant 0 : index
    %c0_4 = arith.constant 0 : index
    %4 = vector.load %arg4[%c0_3, %c0_4] : memref<3x768xf32, #tpu.memory_space<vmem>>, vector<1x768xf32>
    %c1 = arith.constant 1 : index
    %c0_5 = arith.constant 0 : index
    %5 = vector.load %arg4[%c1, %c0_5] : memref<3x768xf32, #tpu.memory_space<vmem>>, vector<1x768xf32>
    %c2 = arith.constant 2 : index
    %c0_6 = arith.constant 0 : index
    %6 = vector.load %arg4[%c2, %c0_6] : memref<3x768xf32, #tpu.memory_space<vmem>>, vector<1x768xf32>
    %7 = vector.broadcast %4 : vector<1x768xf32> to vector<8x768xf32>
    %8 = arith.addf %3, %7 : vector<8x768xf32>
    %c0_7 = arith.constant 0 : index
    %c0_8 = arith.constant 0 : index
    %9 = vector.load %arg3[%c0_7, %c0_8] : memref<8x768xf32, #tpu.memory_space<vmem>>, vector<8x768xf32>
    %10 = arith.addf %8, %9 : vector<8x768xf32>
    %cst_9 = arith.constant dense<0.000000e+00> : vector<8xf32>
    %11 = vector.multi_reduction <add>, %10, %cst_9 [1] : vector<8x768xf32> to vector<8xf32>
    %12 = vector.shape_cast %11 : vector<8xf32> to vector<8x1xf32>
    %cst_10 = arith.constant 7.680000e+02 : f32
    %13 = vector.broadcast %cst_10 : f32 to vector<8x1xf32>
    %14 = arith.divf %12, %13 : vector<8x1xf32>
    %15 = vector.broadcast %14 : vector<8x1xf32> to vector<8x768xf32>
    %16 = arith.subf %10, %15 : vector<8x768xf32>
    %17 = arith.mulf %16, %16 : vector<8x768xf32>
    %cst_11 = arith.constant dense<0.000000e+00> : vector<8xf32>
    %18 = vector.multi_reduction <add>, %17, %cst_11 [1] : vector<8x768xf32> to vector<8xf32>
    %19 = vector.shape_cast %18 : vector<8xf32> to vector<8x1xf32>
    %cst_12 = arith.constant 7.680000e+02 : f32
    %20 = vector.broadcast %cst_12 : f32 to vector<8x1xf32>
    %21 = arith.divf %19, %20 : vector<8x1xf32>
    %cst_13 = arith.constant 9.99999996E-13 : f32
    %22 = vector.broadcast %cst_13 : f32 to vector<8x1xf32>
    %23 = arith.addf %21, %22 : vector<8x1xf32>
    %24 = math.rsqrt %23 : vector<8x1xf32>
    %25 = vector.broadcast %24 : vector<8x1xf32> to vector<8x768xf32>
    %26 = arith.mulf %16, %25 : vector<8x768xf32>
    %27 = vector.broadcast %5 : vector<1x768xf32> to vector<8x768xf32>
    %28 = arith.mulf %27, %26 : vector<8x768xf32>
    %29 = vector.broadcast %6 : vector<1x768xf32> to vector<8x768xf32>
    %30 = arith.addf %28, %29 : vector<8x768xf32>
    %c0_14 = arith.constant 0 : index
    %c0_15 = arith.constant 0 : index
    %31 = vector.load %arg5[%c0_14, %c0_15] : memref<8x768xf32, #tpu.memory_space<vmem>>, vector<8x768xf32>
    tpu.vector_store %arg5[%c0_14, %c0_15], %30 {strides = array<i32>} : memref<8x768xf32, #tpu.memory_space<vmem>>, vector<8x768xf32>,
    return
  }
  func.func @transform_0(%arg0: i32) -> (i32, i32) {
    %c0_i32 = arith.constant 0 : i32
    %c0_i32_0 = arith.constant 0 : i32
    return %arg0, %c0_i32 : i32, i32
  }
  func.func @transform_1(%arg0: i32) -> (i32, i32) {
    %c0_i32 = arith.constant 0 : i32
    %c0_i32_0 = arith.constant 0 : i32
    %c0_i32_1 = arith.constant 0 : i32
    return %c0_i32, %c0_i32_0 : i32, i32
  }
  func.func @transform_2(%arg0: i32) -> (i32, i32) {
    %c0_i32 = arith.constant 0 : i32
    %c0_i32_0 = arith.constant 0 : i32
    return %arg0, %c0_i32 : i32, i32
  }
  func.func @transform_3(%arg0: i32) -> (i32, i32) {
    %c0_i32 = arith.constant 0 : i32
    %c0_i32_0 = arith.constant 0 : i32
    %c0_i32_1 = arith.constant 0 : i32
    return %c0_i32, %c0_i32_0 : i32, i32
  }
  func.func @transform_4(%arg0: i32) -> (i32, i32) {
    %c0_i32 = arith.constant 0 : i32
    %c0_i32_0 = arith.constant 0 : i32
    return %arg0, %c0_i32 : i32, i32
  }
}

</mosaic_0001>

<bundles_post_ra>
// kernel: _bert_self_output_jit.1
= control target key start
LH: loop header
LB: loop body
LE: loop exit
PB: predicated region body
PF: predicated region fallthrough
CT: control target
= control target key end

     0   :  { %9 = vsyncpa [#allocation3], 0  ;;  %s6155_s0 = inlined_call_operand.vmem [shape: f32[16,768], index: 0, kind: input, shape index: {}]   ;;  %s6156_s1 = inlined_call_operand.vmem [shape: bf16[768,768], index: 1, kind: input, shape index: {}]   ;;  %s6157_s2 = inlined_call_operand.vmem [shape: f32[16,768], index: 2, kind: input, shape index: {}]   ;;  %s6158_s3 = inlined_call_operand.vmem [shape: f32[3,768], index: 3, kind: input, shape index: {}]   ;;  %s6159_s4 = inlined_call_operand.hbm [shape: f32[16,768], index: 4, kind: output, shape index: {}]  }
   0x1   :  { %11 = vsyncpa [#allocation3 + $0x1], 0  ;;  %s4227_s15 = smov 0   ;;  %s4229_s16 = smov 0  }
   0x2   :  { %s4231_s17 = smov 0   ;;  %s4233_s18 = smov 0  }
   0x3 LB: > { %s4248_s19 = sadd.s32 4294967295, %s4199_s18   ;;  %s2638_s20 = sadd.s32 4294967294, %s4199_s18   ;;  %s4199_s18 = sphi %s4233_s18, %s6165_s18   ;;  %s4195_s17 = sphi %s4231_s17, %s6164_s17   ;;  %s4191_s16 = sphi %s4229_s16, %s6163_s16   ;;  %s4187_s15 = sphi %s4227_s15, %s6162_s15  }
   0x4   : > { %s4252_s21 = sadd.s32 1, %s4199_s18   ;;  %s118_s22 = sadd.s32 1, %s4195_s17 }
   0x5   : > { %s115_s23 = ssub.s32 %s4199_s18, %s4252_s21  ;;  %p128_p0 = scmp.ne.s32.totalorder %s4195_s17, %s4191_s16 }
   0x6   : > { %p116_p1 = scmp.eq.s32.totalorder %s115_s23, 0  ;;  %p129_p2 = scmp.eq.s32.totalorder %s4248_s19, 1 }
   0x7   : > { %p134_p3 = scmp.ne.s32.totalorder %s4191_s16, %s4187_s15  ;;  %p135_p4 = scmp.eq.s32.totalorder %s2638_s20, 1 }
   0x8   : > { %s4263_s24 = scalar_select %p116_p1, %s4195_s17, %s118_s22  }
   0x9   : > { %p4265_p5 = por %p129_p2, %p128_p0  ;;  %p4269_p6 = por %p135_p4, %p134_p3 }
   0xa   : > { %p2641_p7 = scmp.ge.s32.totalorder %s4199_s18, 1  ;;  %p175_p8 = scmp.lt.s32.totalorder %s4199_s18, 3 }
   0xc   : > { %p176_p9 = pnand %p2641_p7, %p175_p8 }
   0xd   : > { %p206_p10 = scmp.lt.s32.totalorder (!%p176_p9), %s4248_s19, 1  ;;  %s4091_s30 = smul.u32 (!%p176_p9), 48, %s4248_s19 }
   0xe   : > { %179 = sbr.rel (%p176_p9) target bundleno = 735 (0x2df), region = 36 }
   0xf   : > { %s2562_s7 = scalar_lea.hbm (!%p176_p9), %s6159_s4, %s4091_s30 }
  0x10   : > { %s2566_s12 = sshll.u32 (!%p176_p9), %s2562_s7, 4  ;;  %s2567_s12 = int_to_ptr.hbm [resolvable:$true] %s2566_s12 }
  0x13   : > { %v2816_v0 = vld [vmem:[%s6156_s1 + $0x150] sm:$0xf]  ;;  %v3846_v1 = vld [vmem:[%s6156_s1 + $0x164] sm:$0xf0]  ;;  %v2792_v11 = vld [vmem:[%s6156_s1 + $0x120] sm:$0xf] }
  0x14   : > { %v3008_v2 = vld [vmem:[%s6156_s1 + $0x2d0] sm:$0xf]  ;;  %v2817_v3 = vor.u32 %v3846_v1, %v2816_v0  ;;  %v3894_v4 = vld [vmem:[%s6156_s1 + $0x2e4] sm:$0xf0]  ;;  %v3840_v13 = vld [vmem:[%s6156_s1 + $0x134] sm:$0xf0] }
  0x15   : > { %v3200_v5 = vld [vmem:[%s6156_s1 + $0x450] sm:$0xf]  ;;  %v3942_v6 = vld [vmem:[%s6156_s1 + $0x464] sm:$0xf0]  ;;  %v3009_v7 = vor.u32 %v3894_v4, %v3008_v2  ;;  %v2984_v14 = vld [vmem:[%s6156_s1 + $0x2a0] sm:$0xf]  ;;  %v2793_v16 = vor.u32 %v3840_v13, %v2792_v11 }
  0x16   : > { %v3201_v8 = vor.u32 %v3942_v6, %v3200_v5  ;;  %v3392_v9 = vld [vmem:[%s6156_s1 + $0x5d0] sm:$0xf]  ;;  %v3990_v10 = vld [vmem:[%s6156_s1 + $0x5e4] sm:$0xf0]  ;;  %1974 = vmatpush.bf16.msra.mxu0 %v2817_v3  ;;  %v3888_v15 = vld [vmem:[%s6156_s1 + $0x2b4] sm:$0xf0] }
  0x17   : > { %v3393_v12 = vor.u32 %v3990_v10, %v3392_v9  ;;  %1987 = vmatpush.bf16.msra.mxu1 %v3009_v7  ;;  %v2985_v17 = vor.u32 %v3888_v15, %v2984_v14  ;;  %v3176_v18 = vld [vmem:[%s6156_s1 + $0x420] sm:$0xf]  ;;  %v3936_v19 = vld [vmem:[%s6156_s1 + $0x434] sm:$0xf0]  ;;  %v2768_v23 = vld [vmem:[%s6156_s1 + $0xf0] sm:$0xf] }
  0x18   : > { %2000 = vmatpush.bf16.msra.mxu2 %v3201_v8  ;;  %v3368_v20 = vld [vmem:[%s6156_s1 + $0x5a0] sm:$0xf]  ;;  %v3177_v21 = vor.u32 %v3936_v19, %v3176_v18  ;;  %v3984_v22 = vld [vmem:[%s6156_s1 + $0x5b4] sm:$0xf0]  ;;  %v3834_v24 = vld [vmem:[%s6156_s1 + $0x104] sm:$0xf0] }
  0x19   : > { %2013 = vmatpush.bf16.msra.mxu3 %v3393_v12  ;;  %v3369_v25 = vor.u32 %v3984_v22, %v3368_v20  ;;  %v2960_v26 = vld [vmem:[%s6156_s1 + $0x270] sm:$0xf]  ;;  %v3882_v27 = vld [vmem:[%s6156_s1 + $0x284] sm:$0xf0]  ;;  %v2769_v29 = vor.u32 %v3834_v24, %v2768_v23  ;;  %v2744_v35 = vld [vmem:[%s6156_s1 + $0xc0] sm:$0xf] }
  0x1a   : > { %v3152_v28 = vld [vmem:[%s6156_s1 + $0x3f0] sm:$0xf]  ;;  %1975 = vmatpush.bf16.msra.mxu0 %v2793_v16  ;;  %v3930_v30 = vld [vmem:[%s6156_s1 + $0x404] sm:$0xf0]  ;;  %v2961_v33 = vor.u32 %v3882_v27, %v2960_v26  ;;  %v3828_v36 = vld [vmem:[%s6156_s1 + $0xd4] sm:$0xf0] }
  0x1b   : > { %v3344_v31 = vld [vmem:[%s6156_s1 + $0x570] sm:$0xf]  ;;  %v3978_v32 = vld [vmem:[%s6156_s1 + $0x584] sm:$0xf0]  ;;  %1988 = vmatpush.bf16.msra.mxu1 %v2985_v17  ;;  %v3153_v34 = vor.u32 %v3930_v30, %v3152_v28  ;;  %v2936_v37 = vld [vmem:[%s6156_s1 + $0x240] sm:$0xf]  ;;  %v2745_v44 = vor.u32 %v3828_v36, %v2744_v35 }
  0x1c   : > { %2001 = vmatpush.bf16.msra.mxu2 %v3177_v21  ;;  %v3345_v38 = vor.u32 %v3978_v32, %v3344_v31  ;;  %v3876_v39 = vld [vmem:[%s6156_s1 + $0x254] sm:$0xf0]  ;;  %v3128_v40 = vld [vmem:[%s6156_s1 + $0x3c0] sm:$0xf]  ;;  %v2720_v47 = vld [vmem:[%s6156_s1 + $0x90] sm:$0xf] }
  0x1d   : > { %2014 = vmatpush.bf16.msra.mxu3 %v3369_v25  ;;  %v3924_v41 = vld [vmem:[%s6156_s1 + $0x3d4] sm:$0xf0]  ;;  %v3320_v42 = vld [vmem:[%s6156_s1 + $0x540] sm:$0xf]  ;;  %v2937_v45 = vor.u32 %v3876_v39, %v2936_v37  ;;  %v3822_v48 = vld [vmem:[%s6156_s1 + $0xa4] sm:$0xf0] }
  0x1e   : > { %v3972_v43 = vld [vmem:[%s6156_s1 + $0x554] sm:$0xf0]  ;;  %1976 = vmatpush.bf16.msra.mxu0 %v2769_v29  ;;  %v3129_v46 = vor.u32 %v3924_v41, %v3128_v40  ;;  %v2912_v49 = vld [vmem:[%s6156_s1 + $0x210] sm:$0xf]  ;;  %v3870_v51 = vld [vmem:[%s6156_s1 + $0x224] sm:$0xf0]  ;;  %v2721_v56 = vor.u32 %v3822_v48, %v2720_v47 }
  0x1f   : > { %1989 = vmatpush.bf16.msra.mxu1 %v2961_v33  ;;  %v3321_v50 = vor.u32 %v3972_v43, %v3320_v42  ;;  %v3104_v52 = vld [vmem:[%s6156_s1 + $0x390] sm:$0xf]  ;;  %v3918_v53 = vld [vmem:[%s6156_s1 + $0x3a4] sm:$0xf0]  ;;  %v2913_v57 = vor.u32 %v3870_v51, %v2912_v49  ;;  %v2696_v59 = vld [vmem:[%s6156_s1 + $0x60] sm:$0xf] }
  0x20   : > { %2002 = vmatpush.bf16.msra.mxu2 %v3153_v34  ;;  %v3296_v54 = vld [vmem:[%s6156_s1 + $0x510] sm:$0xf]  ;;  %v3966_v55 = vld [vmem:[%s6156_s1 + $0x524] sm:$0xf0]  ;;  %v3105_v58 = vor.u32 %v3918_v53, %v3104_v52  ;;  %v3816_v60 = vld [vmem:[%s6156_s1 + $0x74] sm:$0xf0] }
  0x21   : > { %2015 = vmatpush.bf16.msra.mxu3 %v3345_v38  ;;  %v2888_v61 = vld [vmem:[%s6156_s1 + $0x1e0] sm:$0xf]  ;;  %v3297_v62 = vor.u32 %v3966_v55, %v3296_v54  ;;  %v3864_v63 = vld [vmem:[%s6156_s1 + $0x1f4] sm:$0xf0]  ;;  %v2697_v4 = vor.u32 %v3816_v60, %v2696_v59  ;;  %v2672_v7 = vld [vmem:[%s6156_s1 + $0x30] sm:$0xf] }
  0x22   : > { %1977 = vmatpush.bf16.msra.mxu0 %v2745_v44  ;;  %v3080_v0 = vld [vmem:[%s6156_s1 + $0x360] sm:$0xf]  ;;  %v3912_v1 = vld [vmem:[%s6156_s1 + $0x374] sm:$0xf0]  ;;  %v2889_v5 = vor.u32 %v3864_v63, %v2888_v61  ;;  %v3810_v8 = vld [vmem:[%s6156_s1 + $0x44] sm:$0xf0] }
  0x23   : > { %1990 = vmatpush.bf16.msra.mxu1 %v2937_v45  ;;  %v3272_v2 = vld [vmem:[%s6156_s1 + $0x4e0] sm:$0xf]  ;;  %v3960_v3 = vld [vmem:[%s6156_s1 + $0x4f4] sm:$0xf0]  ;;  %v3081_v6 = vor.u32 %v3912_v1, %v3080_v0  ;;  %v2864_v9 = vld [vmem:[%s6156_s1 + $0x1b0] sm:$0xf]  ;;  %v2673_v16 = vor.u32 %v3810_v8, %v2672_v7 }
  0x24   : > { %2003 = vmatpush.bf16.msra.mxu2 %v3129_v46  ;;  %v3273_v10 = vor.u32 %v3960_v3, %v3272_v2  ;;  %v3858_v11 = vld [vmem:[%s6156_s1 + $0x1c4] sm:$0xf0]  ;;  %v3056_v12 = vld [vmem:[%s6156_s1 + $0x330] sm:$0xf]  ;;  %v2648_v17 = vld [vmem:[%s6156_s1] sm:$0xf] }
  0x25   : > { %2016 = vmatpush.bf16.msra.mxu3 %v3321_v50  ;;  %v3906_v13 = vld [vmem:[%s6156_s1 + $0x344] sm:$0xf0]  ;;  %v3248_v14 = vld [vmem:[%s6156_s1 + $0x4b0] sm:$0xf]  ;;  %v3804_v18 = vld [vmem:[%s6156_s1 + $0x14] sm:$0xf0]  ;;  %v2865_v19 = vor.u32 %v3858_v11, %v2864_v9 }
  0x26   : > { %1978 = vmatpush.bf16.msra.mxu0 %v2721_v56  ;;  %v3954_v15 = vld [vmem:[%s6156_s1 + $0x4c4] sm:$0xf0]  ;;  %v3057_v20 = vor.u32 %v3906_v13, %v3056_v12  ;;  %v2840_v21 = vld [vmem:[%s6156_s1 + $0x180] sm:$0xf]  ;;  %v3852_v22 = vld [vmem:[%s6156_s1 + $0x194] sm:$0xf0]  ;;  %v2649_v31 = vor.u32 %v3804_v18, %v2648_v17 }
  0x27   : > { %1991 = vmatpush.bf16.msra.mxu1 %v2913_v57  ;;  %v3032_v23 = vld [vmem:[%s6156_s1 + $0x300] sm:$0xf]  ;;  %v3249_v24 = vor.u32 %v3954_v15, %v3248_v14  ;;  %v3900_v25 = vld [vmem:[%s6156_s1 + $0x314] sm:$0xf0]  ;;  %v3584_v28 = vld [vmem:[%s6156_s1 + $0x750] sm:$0xf]  ;;  %v2841_v35 = vor.u32 %v3852_v22, %v2840_v21 }
  0x28   : > { %2004 = vmatpush.bf16.msra.mxu2 %v3105_v58  ;;  %v3224_v26 = vld [vmem:[%s6156_s1 + $0x480] sm:$0xf]  ;;  %v3948_v27 = vld [vmem:[%s6156_s1 + $0x494] sm:$0xf0]  ;;  %v4038_v29 = vld [vmem:[%s6156_s1 + $0x764] sm:$0xf0]  ;;  %v3033_v36 = vor.u32 %v3900_v25, %v3032_v23 }
  0x29   : > { %2017 = vmatpush.bf16.msra.mxu3 %v3297_v62  ;;  %v3776_v30 = vld [vmem:[%s6156_s1 + $0x8d0] sm:$0xf]  ;;  %v4086_v32 = vld [vmem:[%s6156_s1 + $0x8e4] sm:$0xf0]  ;;  %v3843_v33 = vld [vmem:[%s6156_s1 + $0x154] sm:$0xf]  ;;  %v3225_v39 = vor.u32 %v3948_v27, %v3224_v26  ;;  %v3585_v40 = vor.u32 %v4038_v29, %v3584_v28 }
  0x2a   : > { %1979 = vmatpush.bf16.msra.mxu0 %v2697_v4  ;;  %v2818_v34 = vld [vmem:[%s6156_s1 + $0x168] sm:$0xf0]  ;;  %v3891_v37 = vld [vmem:[%s6156_s1 + $0x2d4] sm:$0xf]  ;;  %v3777_v41 = vor.u32 %v4086_v32, %v3776_v30  ;;  %v3560_v43 = vld [vmem:[%s6156_s1 + $0x720] sm:$0xf] }
  0x2b   : > { %1992 = vmatpush.bf16.msra.mxu1 %v2889_v5  ;;  %v3010_v38 = vld [vmem:[%s6156_s1 + $0x2e8] sm:$0xf0]  ;;  %v2821_v42 = vor.u32 %v3843_v33, %v2818_v34  ;;  %v4032_v44 = vld [vmem:[%s6156_s1 + $0x734] sm:$0xf0]  ;;  %v3752_v45 = vld [vmem:[%s6156_s1 + $0x8a0] sm:$0xf] }
  0x2c   : > { %2005 = vmatpush.bf16.msra.mxu2 %v3081_v6  ;;  %v3013_v46 = vor.u32 %v3891_v37, %v3010_v38  ;;  %v4080_v47 = vld [vmem:[%s6156_s1 + $0x8b4] sm:$0xf0]  ;;  %v3837_v48 = vld [vmem:[%s6156_s1 + $0x124] sm:$0xf]  ;;  %v2794_v49 = vld [vmem:[%s6156_s1 + $0x138] sm:$0xf0]  ;;  %v3561_v52 = vor.u32 %v4032_v44, %v3560_v43 }
  0x2d   : > { %2018 = vmatpush.bf16.msra.mxu3 %v3273_v10  ;;  %v3885_v50 = vld [vmem:[%s6156_s1 + $0x2a4] sm:$0xf]  ;;  %v2986_v51 = vld [vmem:[%s6156_s1 + $0x2b8] sm:$0xf0]  ;;  %v3753_v53 = vor.u32 %v4080_v47, %v3752_v45  ;;  %v2797_v54 = vor.u32 %v3837_v48, %v2794_v49  ;;  %v3536_v55 = vld [vmem:[%s6156_s1 + $0x6f0] sm:$0xf] }
  0x2e   : > { %1980 = vmatpush.bf16.msra.mxu0 %v2673_v16  ;;  %v4026_v56 = vld [vmem:[%s6156_s1 + $0x704] sm:$0xf0]  ;;  %v3728_v57 = vld [vmem:[%s6156_s1 + $0x870] sm:$0xf]  ;;  %v2989_v58 = vor.u32 %v3885_v50, %v2986_v51  ;;  %v3831_v60 = vld [vmem:[%s6156_s1 + $0xf4] sm:$0xf] }
  0x2f   : > { %1993 = vmatpush.bf16.msra.mxu1 %v2865_v19  ;;  %v4074_v59 = vld [vmem:[%s6156_s1 + $0x884] sm:$0xf0]  ;;  %v2770_v61 = vld [vmem:[%s6156_s1 + $0x108] sm:$0xf0]  ;;  %v3879_v62 = vld [vmem:[%s6156_s1 + $0x274] sm:$0xf]  ;;  %v3537_v0 = vor.u32 %v4026_v56, %v3536_v55 }
  0x30   : > { %2006 = vmatpush.bf16.msra.mxu2 %v3057_v20  ;;  %v2962_v63 = vld [vmem:[%s6156_s1 + $0x288] sm:$0xf0]  ;;  %v3512_v1 = vld [vmem:[%s6156_s1 + $0x6c0] sm:$0xf]  ;;  %v3729_v2 = vor.u32 %v4074_v59, %v3728_v57  ;;  %v2773_v3 = vor.u32 %v3831_v60, %v2770_v61  ;;  %v4020_v4 = vld [vmem:[%s6156_s1 + $0x6d4] sm:$0xf0] }
  0x31   : > { %2019 = vmatpush.bf16.msra.mxu3 %v3249_v24  ;;  %v3704_v5 = vld [vmem:[%s6156_s1 + $0x840] sm:$0xf]  ;;  %v4068_v6 = vld [vmem:[%s6156_s1 + $0x854] sm:$0xf0]  ;;  %v2965_v7 = vor.u32 %v3879_v62, %v2962_v63  ;;  %v3825_v8 = vld [vmem:[%s6156_s1 + $0xc4] sm:$0xf]  ;;  %v3513_v12 = vor.u32 %v4020_v4, %v3512_v1 }
  0x32   : > { %1981 = vmatpush.bf16.msra.mxu0 %v2649_v31  ;;  %v2746_v9 = vld [vmem:[%s6156_s1 + $0xd8] sm:$0xf0]  ;;  %s4559_s28 = scalar_select %p206_p10, %s4248_s19, 1  ;;  %v3873_v10 = vld [vmem:[%s6156_s1 + $0x244] sm:$0xf]  ;;  %v3705_v15 = vor.u32 %v4068_v6, %v3704_v5 }
  0x33   : > { %1994 = vmatpush.bf16.msra.mxu1 %v2841_v35  ;;  %v2938_v11 = vld [vmem:[%s6156_s1 + $0x258] sm:$0xf0]  ;;  %v3488_v13 = vld [vmem:[%s6156_s1 + $0x690] sm:$0xf]  ;;  %v4014_v14 = vld [vmem:[%s6156_s1 + $0x6a4] sm:$0xf0]  ;;  %v2749_v16 = vor.u32 %v3825_v8, %v2746_v9 }
  0x34   : > { %2007 = vmatpush.bf16.msra.mxu2 %v3033_v36  ;;  %s4090_s11 = smul.u32 48, %s4559_s28  ;;  %v3680_v17 = vld [vmem:[%s6156_s1 + $0x810] sm:$0xf]  ;;  %v4062_v18 = vld [vmem:[%s6156_s1 + $0x824] sm:$0xf0]  ;;  %v2941_v20 = vor.u32 %v3873_v10, %v2938_v11  ;;  %v3489_v27 = vor.u32 %v4014_v14, %v3488_v13 }
  0x35   : > { %2020 = vmatpush.bf16.msra.mxu3 %v3225_v39  ;;  %v3819_v19 = vld [vmem:[%s6156_s1 + $0x94] sm:$0xf]  ;;  %v2722_v21 = vld [vmem:[%s6156_s1 + $0xa8] sm:$0xf0]  ;;  %v3681_v32 = vor.u32 %v4062_v18, %v3680_v17  ;;  %v3464_v34 = vld [vmem:[%s6156_s1 + $0x660] sm:$0xf] }
  0x36   : > { %2026 = vmatpush.bf16.msrb.mxu0 %v3585_v40  ;;  %v3867_v22 = vld [vmem:[%s6156_s1 + $0x214] sm:$0xf]  ;;  %v2914_v23 = vld [vmem:[%s6156_s1 + $0x228] sm:$0xf0]  ;;  %s4597_s10 = scalar_lea.vmem %s6155_s0, %s4090_s11  ;;  %v2725_v33 = vor.u32 %v3819_v19, %v2722_v21  ;;  %v4008_v35 = vld [vmem:[%s6156_s1 + $0x674] sm:$0xf0]  ;;  %s5582_s9 = scalar_lea.vmem %s6157_s2, %s4090_s11 }
  0x37   : > { %2039 = vmatpush.bf16.msrb.mxu1 %v3777_v41  ;;  %v218_v24 = vld [vmem:[%s4597_s10 + $0x10] sm:$0xff]  ;;  %v216_v25 = vld [vmem:[%s4597_s10] sm:$0xff]  ;;  %v219_v26 = vld [vmem:[%s4597_s10 + $0x18] sm:$0xff]  ;;  %v2917_v38 = vor.u32 %v3867_v22, %v2914_v23  ;;  %v3465_v44 = vor.u32 %v4008_v35, %v3464_v34  ;;  %s203_s11 = sand.u32 1, %s4191_s16  }
  0x38   : > { %2052 = vmatpush.bf16.msrb.mxu2 %v2821_v42  ;;  %v4602_v28 = vpack.c.bf16 %v218_v24, %v218_v24  ;;  %v4604_v29 = vpack.c.bf16 %v216_v25, %v216_v25  ;;  %v4606_v30 = vpack.c.bf16 %v219_v26, %v219_v26  ;;  %v217_v31 = vld [vmem:[%s4597_s10 + $0x8] sm:$0xff]  ;;  %v3656_v36 = vld [vmem:[%s6156_s1 + $0x7e0] sm:$0xf]  ;;  %v4056_v39 = vld [vmem:[%s6156_s1 + $0x7f4] sm:$0xf0]  ;;  %s4089_s29 = smul.u32 48, %s203_s11 }
  0x39   : > { %2065 = vmatpush.bf16.msrb.mxu3 %v3013_v46  ;;  %v4618_v37 = vpack.c.bf16 %v217_v31, %v217_v31  ;;  %v3813_v40 = vld [vmem:[%s6156_s1 + $0x64] sm:$0xf]  ;;  %v2698_v41 = vld [vmem:[%s6156_s1 + $0x78] sm:$0xf0]  ;;  %v3657_v45 = vor.u32 %v4056_v39, %v3656_v36  ;;  %v3440_v47 = vld [vmem:[%s6156_s1 + $0x630] sm:$0xf] }
  0x3a   : > { %2027 = vmatpush.bf16.msrb.mxu0 %v3561_v52  ;;  %2008 = vmatmul.bf16.vlgmr.msra.gmra.mxu2 %v4602_v28  ;;  %v3861_v42 = vld [vmem:[%s6156_s1 + $0x1e4] sm:$0xf]  ;;  %v2890_v43 = vld [vmem:[%s6156_s1 + $0x1f8] sm:$0xf0]  ;;  %v2701_v46 = vor.u32 %v3813_v40, %v2698_v41  ;;  %v4002_v48 = vld [vmem:[%s6156_s1 + $0x644] sm:$0xf0] }
  0x3b   : > { %2040 = vmatpush.bf16.msrb.mxu1 %v3753_v53  ;;  %1982 = vmatmul.bf16.vlgmr.msra.gmra.mxu0 %v4604_v29  ;;  %v3632_v49 = vld [vmem:[%s6156_s1 + $0x7b0] sm:$0xf]  ;;  %v2893_v50 = vor.u32 %v3861_v42, %v2890_v43  ;;  %v4050_v51 = vld [vmem:[%s6156_s1 + $0x7c4] sm:$0xf0]  ;;  %v3807_v52 = vld [vmem:[%s6156_s1 + $0x34] sm:$0xf]  ;;  %v3441_v56 = vor.u32 %v4002_v48, %v3440_v47 }
  0x3c   : > { %2053 = vmatpush.bf16.msrb.mxu2 %v2797_v54  ;;  %2021 = vmatmul.bf16.vlgmr.msra.gmra.mxu3 %v4606_v30  ;;  %v2674_v53 = vld [vmem:[%s6156_s1 + $0x48] sm:$0xf0]  ;;  %v3855_v54 = vld [vmem:[%s6156_s1 + $0x1b4] sm:$0xf]  ;;  %v3416_v57 = vld [vmem:[%s6156_s1 + $0x600] sm:$0xf]  ;;  %v3633_v59 = vor.u32 %v4050_v51, %v3632_v49 }
  0x3d   : > { %2066 = vmatpush.bf16.msrb.mxu3 %v2989_v58  ;;  %1995 = vmatmul.bf16.vlgmr.msra.gmra.mxu1 %v4618_v37  ;;  %v2866_v55 = vld [vmem:[%s6156_s1 + $0x1c8] sm:$0xf0]  ;;  %v3996_v58 = vld [vmem:[%s6156_s1 + $0x614] sm:$0xf0]  ;;  %v2677_v60 = vor.u32 %v3807_v52, %v2674_v53  ;;  %v3608_v61 = vld [vmem:[%s6156_s1 + $0x780] sm:$0xf] }
  0x3e   : > { %2028 = vmatpush.bf16.msrb.mxu0 %v3537_v0  ;;  %v4044_v62 = vld [vmem:[%s6156_s1 + $0x794] sm:$0xf0]  ;;  %v3801_v63 = vld [vmem:[%s6156_s1 + $0x4] sm:$0xf]  ;;  %v2869_v0 = vor.u32 %v3855_v54, %v2866_v55  ;;  %v2650_v1 = vld [vmem:[%s6156_s1 + $0x18] sm:$0xf0] }
  0x3f   : > { %2041 = vmatpush.bf16.msrb.mxu1 %v3729_v2  ;;  %v3849_v2 = vld [vmem:[%s6156_s1 + $0x184] sm:$0xf]  ;;  %v3939_v4 = vld [vmem:[%s6156_s1 + $0x454] sm:$0xf]  ;;  %v3202_v5 = vld [vmem:[%s6156_s1 + $0x468] sm:$0xf0]  ;;  %v3609_v11 = vor.u32 %v4044_v62, %v3608_v61 }
  0x40   : > { %2054 = vmatpush.bf16.msrb.mxu2 %v2773_v3  ;;  %v2842_v3 = vld [vmem:[%s6156_s1 + $0x198] sm:$0xf0]  ;;  %v3987_v6 = vld [vmem:[%s6156_s1 + $0x5d4] sm:$0xf]  ;;  %v3394_v8 = vld [vmem:[%s6156_s1 + $0x5e8] sm:$0xf0]  ;;  %v3205_v17 = vor.u32 %v3939_v4, %v3202_v5 }
  0x41   : > { %2067 = vmatpush.bf16.msrb.mxu3 %v2965_v7  ;;  %v3417_v7 = vor.u32 %v3996_v58, %v3416_v57  ;;  %v4035_v9 = vld [vmem:[%s6156_s1 + $0x754] sm:$0xf]  ;;  %v3586_v10 = vld [vmem:[%s6156_s1 + $0x768] sm:$0xf0]  ;;  %v3397_v19 = vor.u32 %v3987_v6, %v3394_v8  ;;  %v3933_v21 = vld [vmem:[%s6156_s1 + $0x424] sm:$0xf] }
  0x42   : > { %2029 = vmatpush.bf16.msrb.mxu0 %v3513_v12  ;;  %v2653_v12 = vor.u32 %v3801_v63, %v2650_v1  ;;  %v4083_v13 = vld [vmem:[%s6156_s1 + $0x8d4] sm:$0xf]  ;;  %v3778_v14 = vld [vmem:[%s6156_s1 + $0x8e8] sm:$0xf0]  ;;  %v3178_v22 = vld [vmem:[%s6156_s1 + $0x438] sm:$0xf0] }
  0x43   : > { %2042 = vmatpush.bf16.msrb.mxu1 %v3705_v15  ;;  %v220_v15 = vld [vmem:[%s4597_s10 + $0x20] sm:$0xff]  ;;  %v221_v18 = vld [vmem:[%s4597_s10 + $0x28] sm:$0xff]  ;;  %v3781_v24 = vor.u32 %v4083_v13, %v3778_v14  ;;  %v3370_v25 = vld [vmem:[%s6156_s1 + $0x5b8] sm:$0xf0]  ;;  %v3181_v35 = vor.u32 %v3933_v21, %v3178_v22  ;;  %s205_s19 = scalar_lea.vmem [#allocation2], %s4089_s29  ;;  %s2551_s13 = scalar_lea.sflag [#allocation3], %s203_s11 }
  0x44   : > { %2055 = vmatpush.bf16.msrb.mxu2 %v2749_v16  ;;  %v2845_v16 = vor.u32 %v3849_v2, %v2842_v3  ;;  %v3981_v23 = vld [vmem:[%s6156_s1 + $0x5a4] sm:$0xf]  ;;  %v4731_v31 = vpack.c.bf16 %v220_v15, %v220_v15  ;;  %v4739_v34 = vpack.c.bf16 %v221_v18, %v221_v18  ;;  %v3927_v39 = vld [vmem:[%s6156_s1 + $0x3f4] sm:$0xf]  ;;  %v3154_v40 = vld [vmem:[%s6156_s1 + $0x408] sm:$0xf0] }
  0x45   : > { %2068 = vmatpush.bf16.msrb.mxu3 %v2941_v20  ;;  %v3589_v20 = vor.u32 %v4035_v9, %v3586_v10  ;;  %v4029_v26 = vld [vmem:[%s6156_s1 + $0x724] sm:$0xf]  ;;  %v3373_v36 = vor.u32 %v3981_v23, %v3370_v25  ;;  %v3975_v41 = vld [vmem:[%s6156_s1 + $0x574] sm:$0xf]  ;;  %v3346_v43 = vld [vmem:[%s6156_s1 + $0x588] sm:$0xf0]  ;;  %v3157_v48 = vor.u32 %v3927_v39, %v3154_v40 }
  0x46   : > { %2030 = vmatpush.bf16.msrb.mxu0 %v3489_v27  ;;  %v3562_v27 = vld [vmem:[%s6156_s1 + $0x738] sm:$0xf0]  ;;  %v3730_v47 = vld [vmem:[%s6156_s1 + $0x888] sm:$0xf0]  ;;  %v3349_v49 = vor.u32 %v3975_v41, %v3346_v43  ;;  %v3921_v51 = vld [vmem:[%s6156_s1 + $0x3c4] sm:$0xf] }
  0x47   : > { %2043 = vmatpush.bf16.msrb.mxu1 %v3681_v32  ;;  %v4077_v32 = vld [vmem:[%s6156_s1 + $0x8a4] sm:$0xf]  ;;  %v3130_v52 = vld [vmem:[%s6156_s1 + $0x3d8] sm:$0xf0]  ;;  %v3915_v63 = vld [vmem:[%s6156_s1 + $0x394] sm:$0xf] }
  0x48   : > { %2056 = vmatpush.bf16.msrb.mxu2 %v2725_v33  ;;  %v3754_v33 = vld [vmem:[%s6156_s1 + $0x8b8] sm:$0xf0]  ;;  %v3969_v53 = vld [vmem:[%s6156_s1 + $0x544] sm:$0xf]  ;;  %v3963_v1 = vld [vmem:[%s6156_s1 + $0x514] sm:$0xf] }
  0x49   : > { %2069 = vmatpush.bf16.msrb.mxu3 %v2917_v38  ;;  %v3565_v38 = vor.u32 %v4029_v26, %v3562_v27  ;;  %v3757_v42 = vor.u32 %v4077_v32, %v3754_v33  ;;  %v3322_v55 = vld [vmem:[%s6156_s1 + $0x558] sm:$0xf0]  ;;  %v4065_v58 = vld [vmem:[%s6156_s1 + $0x844] sm:$0xf]  ;;  %v3298_v3 = vld [vmem:[%s6156_s1 + $0x528] sm:$0xf0] }
  0x4a   : > { %2031 = vmatpush.bf16.msrb.mxu0 %v3465_v44  ;;  %v4023_v44 = vld [vmem:[%s6156_s1 + $0x6f4] sm:$0xf]  ;;  %v3514_v57 = vld [vmem:[%s6156_s1 + $0x6d8] sm:$0xf0]  ;;  %v3325_v61 = vor.u32 %v3969_v53, %v3322_v55  ;;  %v3490_v5 = vld [vmem:[%s6156_s1 + $0x6a8] sm:$0xf0]  ;;  %v3301_v9 = vor.u32 %v3963_v1, %v3298_v3 }
  0x4b   : > { %2044 = vmatpush.bf16.msrb.mxu1 %v3657_v45  ;;  %v3538_v45 = vld [vmem:[%s6156_s1 + $0x708] sm:$0xf0]  ;;  %v4011_v4 = vld [vmem:[%s6156_s1 + $0x694] sm:$0xf]  ;;  %v3957_v13 = vld [vmem:[%s6156_s1 + $0x4e4] sm:$0xf] }
  0x4c   : > { %2057 = vmatpush.bf16.msrb.mxu2 %v2701_v46  ;;  %v4071_v46 = vld [vmem:[%s6156_s1 + $0x874] sm:$0xf]  ;;  %v3493_v10 = vor.u32 %v4011_v4, %v3490_v5  ;;  %v3274_v15 = vld [vmem:[%s6156_s1 + $0x4f8] sm:$0xf0]  ;;  %v4053_v18 = vld [vmem:[%s6156_s1 + $0x7e4] sm:$0xf] }
  0x4d   : > { %2070 = vmatpush.bf16.msrb.mxu3 %v2893_v50  ;;  %v3541_v50 = vor.u32 %v4023_v44, %v3538_v45  ;;  %v3733_v54 = vor.u32 %v4071_v46, %v3730_v47  ;;  %v4059_v6 = vld [vmem:[%s6156_s1 + $0x814] sm:$0xf]  ;;  %v3277_v21 = vor.u32 %v3957_v13, %v3274_v15  ;;  %v3250_v27 = vld [vmem:[%s6156_s1 + $0x4c8] sm:$0xf0]  ;;  %v3897_v39 = vld [vmem:[%s6156_s1 + $0x304] sm:$0xf] }
  0x4e   : > { %2032 = vmatpush.bf16.msrb.mxu0 %v3441_v56  ;;  %v4017_v56 = vld [vmem:[%s6156_s1 + $0x6c4] sm:$0xf]  ;;  %v3903_v23 = vld [vmem:[%s6156_s1 + $0x334] sm:$0xf]  ;;  %v3442_v33 = vld [vmem:[%s6156_s1 + $0x648] sm:$0xf0] }
  0x4f   : > { %2045 = vmatpush.bf16.msrb.mxu1 %v3633_v59  ;;  %v3706_v59 = vld [vmem:[%s6156_s1 + $0x858] sm:$0xf0]  ;;  %v3517_v62 = vor.u32 %v4017_v56, %v3514_v57  ;;  %v3951_v25 = vld [vmem:[%s6156_s1 + $0x4b4] sm:$0xf]  ;;  %v3945_v43 = vld [vmem:[%s6156_s1 + $0x484] sm:$0xf] }
  0x50   : > { %2058 = vmatpush.bf16.msrb.mxu2 %v2677_v60  ;;  %v3133_v60 = vor.u32 %v3921_v51, %v3130_v52  ;;  %v3709_v2 = vor.u32 %v4065_v58, %v3706_v59  ;;  %v3999_v32 = vld [vmem:[%s6156_s1 + $0x634] sm:$0xf]  ;;  %v3034_v40 = vld [vmem:[%s6156_s1 + $0x318] sm:$0xf0]  ;;  %v3253_v41 = vor.u32 %v3951_v25, %v3250_v27  ;;  %v3993_v45 = vld [vmem:[%s6156_s1 + $0x604] sm:$0xf] }
  0x51   : > { %2071 = vmatpush.bf16.msrb.mxu3 %v2869_v0  ;;  %v3106_v0 = vld [vmem:[%s6156_s1 + $0x3a8] sm:$0xf0]  ;;  %v3226_v44 = vld [vmem:[%s6156_s1 + $0x498] sm:$0xf0]  ;;  %v3847_v51 = vld [vmem:[%s6156_s1 + $0x16c] sm:$0xf0]  ;;  %v3037_v53 = vor.u32 %v3897_v39, %v3034_v40 }
  0x52   : > { %2033 = vmatpush.bf16.msrb.mxu0 %v3417_v7  ;;  %v3682_v7 = vld [vmem:[%s6156_s1 + $0x828] sm:$0xf0]  ;;  %v3109_v8 = vor.u32 %v3915_v63, %v3106_v0  ;;  %v3418_v47 = vld [vmem:[%s6156_s1 + $0x618] sm:$0xf0]  ;;  %v3016_v52 = vld [vmem:[%s6156_s1 + $0x2d8] sm:$0xf]  ;;  %v3229_v57 = vor.u32 %v3945_v43, %v3226_v44 }
  0x53   : > { %2046 = vmatpush.bf16.msrb.mxu1 %v3609_v11  ;;  %v3909_v11 = vld [vmem:[%s6156_s1 + $0x364] sm:$0xf]  ;;  %v3685_v14 = vor.u32 %v4059_v6, %v3682_v7  ;;  %v3208_v55 = vld [vmem:[%s6156_s1 + $0x458] sm:$0xf]  ;;  %v3943_v56 = vld [vmem:[%s6156_s1 + $0x46c] sm:$0xf0]  ;;  %v3421_v58 = vor.u32 %v3993_v45, %v3418_v47 }
  0x54   : > { %2059 = vmatpush.bf16.msrb.mxu2 %v2653_v12  ;;  %v3082_v12 = vld [vmem:[%s6156_s1 + $0x378] sm:$0xf0]  ;;  %v3400_v59 = vld [vmem:[%s6156_s1 + $0x5d8] sm:$0xf]  ;;  %v3209_v0 = vor.u32 %v3943_v56, %v3208_v55  ;;  %v2800_v1 = vld [vmem:[%s6156_s1 + $0x128] sm:$0xf] }
  0x55   : > { %2072 = vmatpush.bf16.msrb.mxu3 %v2845_v16  ;;  %2034 = vmatmul.bf16.vlgmr.msrb.gmra.mxu0 %v4731_v31  ;;  %v4005_v16 = vld [vmem:[%s6156_s1 + $0x664] sm:$0xf]  ;;  %v2992_v3 = vld [vmem:[%s6156_s1 + $0x2a8] sm:$0xf]  ;;  %v3889_v5 = vld [vmem:[%s6156_s1 + $0x2bc] sm:$0xf0] }
  0x56   : > { %2078 = vmatpush.bf16.msra.mxu0 %v3205_v17  ;;  %2047 = vmatmul.bf16.vlgmr.msrb.gmra.mxu1 %v4739_v34  ;;  %v3466_v17 = vld [vmem:[%s6156_s1 + $0x678] sm:$0xf0]  ;;  %v3184_v6 = vld [vmem:[%s6156_s1 + $0x428] sm:$0xf]  ;;  %v3937_v7 = vld [vmem:[%s6156_s1 + $0x43c] sm:$0xf0] }
  0x57   : > { %2091 = vmatpush.bf16.msra.mxu1 %v3397_v19  ;;  %2060 = vmatmul.bf16.vlgmr.msrb.gmra.mxu2 %v4604_v29  ;;  %v3658_v19 = vld [vmem:[%s6156_s1 + $0x7f8] sm:$0xf0]  ;;  %v3469_v22 = vor.u32 %v4005_v16, %v3466_v17  ;;  %v2776_v13 = vld [vmem:[%s6156_s1 + $0xf8] sm:$0xf]  ;;  %v3883_v17 = vld [vmem:[%s6156_s1 + $0x28c] sm:$0xf0] }
  0x58   : > { %2104 = vmatpush.bf16.msra.mxu2 %v3589_v20  ;;  %2073 = vmatmul.bf16.vlgmr.msrb.gmra.mxu3 %v4618_v37  ;;  %v3085_v20 = vor.u32 %v3909_v11, %v3082_v12  ;;  %v3661_v26 = vor.u32 %v4053_v18, %v3658_v19  ;;  %v2993_v11 = vor.u32 %v3889_v5, %v2992_v3  ;;  %v2968_v15 = vld [vmem:[%s6156_s1 + $0x278] sm:$0xf]  ;;  %v3931_v19 = vld [vmem:[%s6156_s1 + $0x40c] sm:$0xf0]  ;;  %v2752_v25 = vld [vmem:[%s6156_s1 + $0xc8] sm:$0xf] }
  0x59   : > { %2117 = vmatpush.bf16.msra.mxu3 %v3781_v24  ;;  %v3058_v24 = vld [vmem:[%s6156_s1 + $0x348] sm:$0xf0]  ;;  %v3185_v12 = vor.u32 %v3937_v7, %v3184_v6  ;;  %v3160_v18 = vld [vmem:[%s6156_s1 + $0x3f8] sm:$0xf]  ;;  %v2944_v27 = vld [vmem:[%s6156_s1 + $0x248] sm:$0xf] }
  0x5a   : > { %2079 = vmatpush.bf16.msra.mxu0 %v3181_v35  ;;  %v4047_v35 = vld [vmem:[%s6156_s1 + $0x7b4] sm:$0xf]  ;;  %v3973_v39 = vld [vmem:[%s6156_s1 + $0x55c] sm:$0xf0]  ;;  %v2728_v43 = vld [vmem:[%s6156_s1 + $0x98] sm:$0xf] }
  0x5b   : > { %2092 = vmatpush.bf16.msra.mxu1 %v3373_v36  ;;  %v3634_v36 = vld [vmem:[%s6156_s1 + $0x7c8] sm:$0xf0]  ;;  %v3823_v44 = vld [vmem:[%s6156_s1 + $0xac] sm:$0xf0]  ;;  %v2920_v45 = vld [vmem:[%s6156_s1 + $0x218] sm:$0xf] }
  0x5c   : > { %2105 = vmatpush.bf16.msra.mxu2 %v3565_v38  ;;  %v3061_v38 = vor.u32 %v3903_v23, %v3058_v24  ;;  %v3637_v46 = vor.u32 %v4047_v35, %v3634_v36  ;;  %v2969_v23 = vor.u32 %v3883_v17, %v2968_v15  ;;  %v3161_v24 = vor.u32 %v3931_v19, %v3160_v18  ;;  %v3136_v35 = vld [vmem:[%s6156_s1 + $0x3c8] sm:$0xf]  ;;  %v3925_v36 = vld [vmem:[%s6156_s1 + $0x3dc] sm:$0xf0]  ;;  %v3871_v47 = vld [vmem:[%s6156_s1 + $0x22c] sm:$0xf0] }
  0x5d   : > { %2118 = vmatpush.bf16.msra.mxu3 %v3757_v42  ;;  %v3445_v42 = vor.u32 %v3999_v32, %v3442_v33  ;;  %v3877_v33 = vld [vmem:[%s6156_s1 + $0x25c] sm:$0xf0]  ;;  %v2704_v55 = vld [vmem:[%s6156_s1 + $0x68] sm:$0xf]  ;;  %v2680_v3 = vld [vmem:[%s6156_s1 + $0x38] sm:$0xf] }
  0x5e   : > { %2080 = vmatpush.bf16.msra.mxu0 %v3157_v48  ;;  %v4041_v48 = vld [vmem:[%s6156_s1 + $0x784] sm:$0xf]  ;;  %v3817_v56 = vld [vmem:[%s6156_s1 + $0x7c] sm:$0xf0]  ;;  %v2872_v5 = vld [vmem:[%s6156_s1 + $0x1b8] sm:$0xf] }
  0x5f   : > { %2093 = vmatpush.bf16.msra.mxu1 %v3349_v49  ;;  %v3610_v49 = vld [vmem:[%s6156_s1 + $0x798] sm:$0xf0]  ;;  %v3859_v7 = vld [vmem:[%s6156_s1 + $0x1cc] sm:$0xf0]  ;;  %v2848_v17 = vld [vmem:[%s6156_s1 + $0x188] sm:$0xf] }
  0x60   : > { %2106 = vmatpush.bf16.msra.mxu2 %v3541_v50  ;;  %v2824_v50 = vld [vmem:[%s6156_s1 + $0x158] sm:$0xf]  ;;  %v2873_v15 = vor.u32 %v3859_v7, %v2872_v5  ;;  %v3853_v18 = vld [vmem:[%s6156_s1 + $0x19c] sm:$0xf0]  ;;  %v3040_v19 = vld [vmem:[%s6156_s1 + $0x308] sm:$0xf] }
  0x61   : > { %2119 = vmatpush.bf16.msra.mxu3 %v3733_v54  ;;  %v3895_v54 = vld [vmem:[%s6156_s1 + $0x2ec] sm:$0xf0]  ;;  %v3520_v5 = vld [vmem:[%s6156_s1 + $0x6c8] sm:$0xf]  ;;  %s2564_s8 = sshll.u32 %s205_s19, 4  ;;  %s4151_s10 = sshra.s32 %s2567_s12, 4  ;;  %s2565_s8 = int_to_ptr.vmem [resolvable:$true] %s2564_s8  ;;  %s4152_s10 = int_to_ptr.hbm [resolvable:$true] %s4151_s10 }
  0x62   : > { %2081 = vmatpush.bf16.msra.mxu0 %v3133_v60  ;;  %v3991_v60 = vld [vmem:[%s6156_s1 + $0x5ec] sm:$0xf0]  ;;  %v3017_v63 = vor.u32 %v3895_v54, %v3016_v52  ;;  %v2729_v52 = vor.u32 %v3823_v44, %v2728_v43  ;;  %v3712_v7 = vld [vmem:[%s6156_s1 + $0x848] sm:$0xf]  ;;  %s4153_s14 = scalar_lea.hbm %s4152_s10, 48  ;;  %p4158_p0 = scmp.lt.s32.totalorder %s4152_s10, %s6159_s4 }
  0x63   : > { %2094 = vmatpush.bf16.msra.mxu1 %v3325_v61  ;;  %v3613_v61 = vor.u32 %v4041_v48, %v3610_v49  ;;  %v3401_v4 = vor.u32 %v3991_v60, %v3400_v59  ;;  %v3112_v48 = vld [vmem:[%s6156_s1 + $0x398] sm:$0xf]  ;;  %v3919_v49 = vld [vmem:[%s6156_s1 + $0x3ac] sm:$0xf0]  ;;  %v3865_v59 = vld [vmem:[%s6156_s1 + $0x1fc] sm:$0xf0]  ;;  %p4154_p11 = scmp.ne.s32.totalorder %s4152_s10, %s4153_s14 }
  0x64   : > { %2107 = vmatpush.bf16.msra.mxu2 %v3517_v62  ;;  %v2825_v62 = vor.u32 %v3847_v51, %v2824_v50  ;;  %v3304_v50 = vld [vmem:[%s6156_s1 + $0x518] sm:$0xf]  ;;  %v3967_v51 = vld [vmem:[%s6156_s1 + $0x52c] sm:$0xf0]  ;;  %v3113_v54 = vor.u32 %v3919_v49, %v3112_v48  ;;  %v3088_v60 = vld [vmem:[%s6156_s1 + $0x368] sm:$0xf] }
  0x65   : > { %2120 = vmatpush.bf16.msra.mxu3 %v3709_v2  ;;  %v3841_v2 = vld [vmem:[%s6156_s1 + $0x13c] sm:$0xf0]  ;;  %p4155_p12 = pnand %p4154_p11, %p4265_p5 }
  0x66   : > { %2082 = vmatpush.bf16.msra.mxu0 %v3109_v8  ;;  %v3376_v8 = vld [vmem:[%s6156_s1 + $0x5a8] sm:$0xf]  ;;  %v4081_v49 = vld [vmem:[%s6156_s1 + $0x8bc] sm:$0xf0] }
  0x67   : > { %2095 = vmatpush.bf16.msra.mxu1 %v3301_v9  ;;  %v3985_v9 = vld [vmem:[%s6156_s1 + $0x5bc] sm:$0xf0]  ;;  %p4156_p13 = pneg %p4155_p12 }
  0x68   : > { %2108 = vmatpush.bf16.msra.mxu2 %v3493_v10  ;;  %v2801_v10 = vor.u32 %v3841_v2, %v2800_v1  ;;  %v3377_v16 = vor.u32 %v3985_v9, %v3376_v8  ;;  %v3064_v8 = vld [vmem:[%s6156_s1 + $0x338] sm:$0xf]  ;;  %v3907_v9 = vld [vmem:[%s6156_s1 + $0x34c] sm:$0xf0] }
  0x69   : > { %2121 = vmatpush.bf16.msra.mxu3 %v3685_v14  ;;  %v3835_v14 = vld [vmem:[%s6156_s1 + $0x10c] sm:$0xf0] }
  0x6a   : > { %2083 = vmatpush.bf16.msra.mxu0 %v3085_v20  ;;  %v3352_v20 = vld [vmem:[%s6156_s1 + $0x578] sm:$0xf] }
  0x6b   : > { %2096 = vmatpush.bf16.msra.mxu1 %v3277_v21  ;;  %v3979_v21 = vld [vmem:[%s6156_s1 + $0x58c] sm:$0xf0] }
  0x6c   : > { %2109 = vmatpush.bf16.msra.mxu2 %v3469_v22  ;;  %v2777_v22 = vor.u32 %v3835_v14, %v2776_v13  ;;  %v3353_v32 = vor.u32 %v3979_v21, %v3352_v20  ;;  %v2656_v13 = vld [vmem:[%s6156_s1 + $0x8] sm:$0xf]  ;;  %v3805_v14 = vld [vmem:[%s6156_s1 + $0x1c] sm:$0xf0] }
  0x6d   : > { %2122 = vmatpush.bf16.msra.mxu3 %v3661_v26  ;;  %v3829_v26 = vld [vmem:[%s6156_s1 + $0xdc] sm:$0xf0] }
  0x6e   : > { %2084 = vmatpush.bf16.msra.mxu0 %v3061_v38  ;;  %v3328_v38 = vld [vmem:[%s6156_s1 + $0x548] sm:$0xf]  ;;  %v2753_v40 = vor.u32 %v3829_v26, %v2752_v25  ;;  %v3901_v21 = vld [vmem:[%s6156_s1 + $0x31c] sm:$0xf0]  ;;  %v4039_v25 = vld [vmem:[%s6156_s1 + $0x76c] sm:$0xf0] }
  0x6f   : > { %2097 = vmatpush.bf16.msra.mxu1 %v3253_v41  ;;  %v2945_v41 = vor.u32 %v3877_v33, %v2944_v27  ;;  %v3784_v26 = vld [vmem:[%s6156_s1 + $0x8d8] sm:$0xf]  ;;  %v2657_v27 = vor.u32 %v3805_v14, %v2656_v13  ;;  %v3844_v33 = vld [vmem:[%s6156_s1 + $0x15c] sm:$0xf]  ;;  %v2946_v13 = vld [vmem:[%s6156_s1 + $0x260] sm:$0xf0] }
  0x70   : > { %2110 = vmatpush.bf16.msra.mxu2 %v3445_v42  ;;  %v3137_v42 = vor.u32 %v3925_v36, %v3136_v35  ;;  %v2826_v35 = vld [vmem:[%s6156_s1 + $0x170] sm:$0xf0]  ;;  %v2849_v36 = vor.u32 %v3853_v18, %v2848_v17  ;;  %v3496_v17 = vld [vmem:[%s6156_s1 + $0x698] sm:$0xf]  ;;  %v4015_v18 = vld [vmem:[%s6156_s1 + $0x6ac] sm:$0xf0] }
  0x71   : > { %2123 = vmatpush.bf16.msra.mxu3 %v3637_v46  ;;  %v3329_v46 = vor.u32 %v3973_v39, %v3328_v38  ;;  %v3041_v38 = vor.u32 %v3901_v21, %v3040_v19  ;;  %v3892_v39 = vld [vmem:[%s6156_s1 + $0x2dc] sm:$0xf]  ;;  %v2829_v44 = vor.u32 %v3844_v33, %v2826_v35  ;;  %v3688_v19 = vld [vmem:[%s6156_s1 + $0x818] sm:$0xf]  ;;  %v4063_v21 = vld [vmem:[%s6156_s1 + $0x82c] sm:$0xf0] }
  0x72   : > { %2085 = vmatpush.bf16.msra.mxu0 %v3037_v53  ;;  %v2921_v53 = vor.u32 %v3871_v47, %v2920_v45  ;;  %v3568_v45 = vld [vmem:[%s6156_s1 + $0x728] sm:$0xf]  ;;  %v4009_v35 = vld [vmem:[%s6156_s1 + $0x67c] sm:$0xf0] }
  0x73   : > { %2098 = vmatpush.bf16.msra.mxu1 %v3229_v57  ;;  %v2896_v57 = vld [vmem:[%s6156_s1 + $0x1e8] sm:$0xf] }
  0x74   : > { %2111 = vmatpush.bf16.msra.mxu2 %v3421_v58  ;;  %v3305_v58 = vor.u32 %v3967_v51, %v3304_v50  ;;  %v2897_v1 = vor.u32 %v3865_v59, %v2896_v57  ;;  %v3760_v47 = vld [vmem:[%s6156_s1 + $0x8a8] sm:$0xf]  ;;  %v3838_v50 = vld [vmem:[%s6156_s1 + $0x12c] sm:$0xf]  ;;  %v2802_v51 = vld [vmem:[%s6156_s1 + $0x140] sm:$0xf0] }
  0x75   : > { %2124 = vmatpush.bf16.msra.mxu3 %v3613_v61  ;;  %2086 = vmatmul.bf16.vlgmr.msra.gmra.mxu0 %v4602_v28  ;;  %v3913_v61 = vld [vmem:[%s6156_s1 + $0x37c] sm:$0xf0]  ;;  %v3544_v57 = vld [vmem:[%s6156_s1 + $0x6f8] sm:$0xf]  ;;  %v3472_v33 = vld [vmem:[%s6156_s1 + $0x668] sm:$0xf] }
  0x76   : > { %2130 = vmatpush.bf16.msrb.mxu0 %v2825_v62  ;;  %2099 = vmatmul.bf16.vlgmr.msra.gmra.mxu1 %v4606_v30  ;;  %v3280_v62 = vld [vmem:[%s6156_s1 + $0x4e8] sm:$0xf]  ;;  %v3089_v2 = vor.u32 %v3913_v61, %v3088_v60  ;;  %v3736_v59 = vld [vmem:[%s6156_s1 + $0x878] sm:$0xf]  ;;  %v4075_v61 = vld [vmem:[%s6156_s1 + $0x88c] sm:$0xf0] }
  0x77   : > { %2143 = vmatpush.bf16.msrb.mxu1 %v3017_v63  ;;  %2112 = vmatmul.bf16.vlgmr.msra.gmra.mxu2 %v4731_v31  ;;  %v3961_v63 = vld [vmem:[%s6156_s1 + $0x4fc] sm:$0xf0] }
  0x78   : > { %2156 = vmatpush.bf16.msrb.mxu2 %v3209_v0  ;;  %2125 = vmatmul.bf16.vlgmr.msra.gmra.mxu3 %v4739_v34  ;;  %v2705_v0 = vor.u32 %v3817_v56, %v2704_v55  ;;  %v3281_v6 = vor.u32 %v3961_v63, %v3280_v62  ;;  %v3761_v55 = vor.u32 %v4081_v49, %v3760_v47  ;;  %v3832_v62 = vld [vmem:[%s6156_s1 + $0xfc] sm:$0xf]  ;;  %v2778_v63 = vld [vmem:[%s6156_s1 + $0x110] sm:$0xf0]  ;;  %v3448_v47 = vld [vmem:[%s6156_s1 + $0x638] sm:$0xf] }
  0x79   : > { %2169 = vmatpush.bf16.msrb.mxu3 %v3401_v4  ;;  %v3811_v4 = vld [vmem:[%s6156_s1 + $0x4c] sm:$0xf0]  ;;  %v2805_v56 = vor.u32 %v3838_v50, %v2802_v51  ;;  %v3640_v49 = vld [vmem:[%s6156_s1 + $0x7b8] sm:$0xf] }
  0x7a   : > { %2131 = vmatpush.bf16.msrb.mxu0 %v2801_v10  ;;  %v3256_v10 = vld [vmem:[%s6156_s1 + $0x4b8] sm:$0xf]  ;;  %v4051_v51 = vld [vmem:[%s6156_s1 + $0x7cc] sm:$0xf0] }
  0x7b   : > { %2144 = vmatpush.bf16.msrb.mxu1 %v2993_v11  ;;  %v3955_v11 = vld [vmem:[%s6156_s1 + $0x4cc] sm:$0xf0] }
  0x7c   : > { %2157 = vmatpush.bf16.msrb.mxu2 %v3185_v12  ;;  %v2681_v12 = vor.u32 %v3811_v4, %v2680_v3  ;;  %v3257_v20 = vor.u32 %v3955_v11, %v3256_v10  ;;  %v3737_v3 = vor.u32 %v4075_v61, %v3736_v59  ;;  %v2781_v4 = vor.u32 %v3832_v62, %v2778_v63  ;;  %v3826_v10 = vld [vmem:[%s6156_s1 + $0xcc] sm:$0xf]  ;;  %v2754_v11 = vld [vmem:[%s6156_s1 + $0xe0] sm:$0xf0]  ;;  %v3616_v61 = vld [vmem:[%s6156_s1 + $0x788] sm:$0xf] }
  0x7d   : > { %2170 = vmatpush.bf16.msrb.mxu3 %v3377_v16  ;;  %v3065_v16 = vor.u32 %v3907_v9, %v3064_v8  ;;  %v4069_v9 = vld [vmem:[%s6156_s1 + $0x85c] sm:$0xf0]  ;;  %v3641_v59 = vor.u32 %v4051_v51, %v3640_v49  ;;  %v3802_v63 = vld [vmem:[%s6156_s1 + $0xc] sm:$0xf] }
  0x7e   : > { %2132 = vmatpush.bf16.msrb.mxu0 %v2777_v22  ;;  %v3232_v22 = vld [vmem:[%s6156_s1 + $0x488] sm:$0xf]  ;;  %v4045_v62 = vld [vmem:[%s6156_s1 + $0x79c] sm:$0xf0]  ;;  %v3922_v49 = vld [vmem:[%s6156_s1 + $0x3cc] sm:$0xf] }
  0x7f   : > { %2145 = vmatpush.bf16.msrb.mxu1 %v2969_v23  ;;  %v3949_v23 = vld [vmem:[%s6156_s1 + $0x49c] sm:$0xf0]  ;;  %v3970_v51 = vld [vmem:[%s6156_s1 + $0x54c] sm:$0xf] }
  0x80   : > { %2158 = vmatpush.bf16.msrb.mxu2 %v3161_v24  ;;  %v3592_v24 = vld [vmem:[%s6156_s1 + $0x758] sm:$0xf] }
  0x81   : > { %2171 = vmatpush.bf16.msrb.mxu3 %v3353_v32  ;;  %v4087_v32 = vld [vmem:[%s6156_s1 + $0x8ec] sm:$0xf0] }
  0x82   : > { %2133 = vmatpush.bf16.msrb.mxu0 %v2753_v40  ;;  %v3018_v40 = vld [vmem:[%s6156_s1 + $0x2f0] sm:$0xf0]  ;;  %v3785_v43 = vor.u32 %v4087_v32, %v3784_v26  ;;  %v3497_v26 = vor.u32 %v4015_v18, %v3496_v17 }
  0x83   : > { %2146 = vmatpush.bf16.msrb.mxu1 %v2945_v41  ;;  %v3233_v41 = vor.u32 %v3949_v23, %v3232_v22  ;;  %v3021_v48 = vor.u32 %v3892_v39, %v3018_v40  ;;  %v3820_v22 = vld [vmem:[%s6156_s1 + $0x9c] sm:$0xf]  ;;  %v2730_v23 = vld [vmem:[%s6156_s1 + $0xb0] sm:$0xf0]  ;;  %v4057_v39 = vld [vmem:[%s6156_s1 + $0x7fc] sm:$0xf0] }
  0x84   : > { %2159 = vmatpush.bf16.msrb.mxu2 %v3137_v42  ;;  %v3593_v42 = vor.u32 %v4039_v25, %v3592_v24  ;;  %v3868_v24 = vld [vmem:[%s6156_s1 + $0x21c] sm:$0xf]  ;;  %v2922_v25 = vld [vmem:[%s6156_s1 + $0x230] sm:$0xf0]  ;;  %v2733_v32 = vor.u32 %v3820_v22, %v2730_v23  ;;  %v3814_v40 = vld [vmem:[%s6156_s1 + $0x6c] sm:$0xf] }
  0x85   : > { %2172 = vmatpush.bf16.msrb.mxu3 %v3329_v46  ;;  %v4033_v46 = vld [vmem:[%s6156_s1 + $0x73c] sm:$0xf0]  ;;  %v3378_v23 = vld [vmem:[%s6156_s1 + $0x5c0] sm:$0xf0] }
  0x86   : > { %2134 = vmatpush.bf16.msrb.mxu0 %v2729_v52  ;;  %v3886_v52 = vld [vmem:[%s6156_s1 + $0x2ac] sm:$0xf] }
  0x87   : > { %2147 = vmatpush.bf16.msrb.mxu1 %v2921_v53  ;;  %v2994_v53 = vld [vmem:[%s6156_s1 + $0x2c0] sm:$0xf0] }
  0x88   : > { %2160 = vmatpush.bf16.msrb.mxu2 %v3113_v54  ;;  %v3569_v54 = vor.u32 %v4033_v46, %v3568_v45  ;;  %v2997_v60 = vor.u32 %v3886_v52, %v2994_v53  ;;  %v3808_v52 = vld [vmem:[%s6156_s1 + $0x3c] sm:$0xf]  ;;  %v2682_v53 = vld [vmem:[%s6156_s1 + $0x50] sm:$0xf0] }
  0x89   : > { %2173 = vmatpush.bf16.msrb.mxu3 %v3305_v58  ;;  %v4027_v58 = vld [vmem:[%s6156_s1 + $0x70c] sm:$0xf0] }
  0x8a   : > { %2135 = vmatpush.bf16.msrb.mxu0 %v2705_v0  ;;  %v3880_v0 = vld [vmem:[%s6156_s1 + $0x27c] sm:$0xf] }
  0x8b   : > { %2148 = vmatpush.bf16.msrb.mxu1 %v2897_v1  ;;  %v2970_v1 = vld [vmem:[%s6156_s1 + $0x290] sm:$0xf0] }
  0x8c   : > { %2161 = vmatpush.bf16.msrb.mxu2 %v3089_v2  ;;  %v3545_v2 = vor.u32 %v4027_v58, %v3544_v57  ;;  %v2973_v8 = vor.u32 %v3880_v0, %v2970_v1  ;;  %v3424_v57 = vld [vmem:[%s6156_s1 + $0x608] sm:$0xf]  ;;  %v3997_v58 = vld [vmem:[%s6156_s1 + $0x61c] sm:$0xf0]  ;;  %v2658_v1 = vld [vmem:[%s6156_s1 + $0x20] sm:$0xf0] }
  0x8d   : > { %2174 = vmatpush.bf16.msrb.mxu3 %v3281_v6  ;;  %v4021_v6 = vld [vmem:[%s6156_s1 + $0x6dc] sm:$0xf0] }
  0x8e   : > { %2136 = vmatpush.bf16.msrb.mxu0 %v2681_v12  ;;  %v3874_v12 = vld [vmem:[%s6156_s1 + $0x24c] sm:$0xf]  ;;  %v3521_v14 = vor.u32 %v4021_v6, %v3520_v5  ;;  %v3210_v5 = vld [vmem:[%s6156_s1 + $0x470] sm:$0xf0]  ;;  %v3988_v6 = vld [vmem:[%s6156_s1 + $0x5dc] sm:$0xf] }
  0x8f   : > { %2149 = vmatpush.bf16.msrb.mxu1 %v2873_v15  ;;  %v3713_v15 = vor.u32 %v4069_v9, %v3712_v7  ;;  %v3425_v7 = vor.u32 %v3997_v58, %v3424_v57  ;;  %v4036_v9 = vld [vmem:[%s6156_s1 + $0x75c] sm:$0xf]  ;;  %v3714_v57 = vld [vmem:[%s6156_s1 + $0x860] sm:$0xf0] }
  0x90   : > { %2162 = vmatpush.bf16.msrb.mxu2 %v3065_v16  ;;  %v2757_v16 = vor.u32 %v3826_v10, %v2754_v11  ;;  %v3594_v10 = vld [vmem:[%s6156_s1 + $0x770] sm:$0xf0]  ;;  %v3617_v11 = vor.u32 %v4045_v62, %v3616_v61  ;;  %v3916_v61 = vld [vmem:[%s6156_s1 + $0x39c] sm:$0xf] }
  0x91   : > { %2175 = vmatpush.bf16.msrb.mxu3 %v3257_v20  ;;  %v2949_v20 = vor.u32 %v3874_v12, %v2946_v13  ;;  %v2661_v12 = vor.u32 %v3802_v63, %v2658_v1  ;;  %v4084_v13 = vld [vmem:[%s6156_s1 + $0x8dc] sm:$0xf]  ;;  %v3597_v18 = vor.u32 %v4036_v9, %v3594_v10  ;;  %v3114_v62 = vld [vmem:[%s6156_s1 + $0x3b0] sm:$0xf0] }
  0x92   : > { %2137 = vmatpush.bf16.msrb.mxu0 %v2657_v27  ;;  %v3689_v27 = vor.u32 %v4063_v21, %v3688_v19  ;;  %v3934_v19 = vld [vmem:[%s6156_s1 + $0x42c] sm:$0xf]  ;;  %v3964_v63 = vld [vmem:[%s6156_s1 + $0x51c] sm:$0xf]  ;;  %v3306_v1 = vld [vmem:[%s6156_s1 + $0x530] sm:$0xf0] }
  0x93   : > { %2150 = vmatpush.bf16.msrb.mxu1 %v2849_v36  ;;  %v3664_v36 = vld [vmem:[%s6156_s1 + $0x7e8] sm:$0xf]  ;;  %v3982_v21 = vld [vmem:[%s6156_s1 + $0x5ac] sm:$0xf]  ;;  %v3309_v9 = vor.u32 %v3964_v63, %v3306_v1  ;;  %v3408_v63 = vld [vmem:[%s6156_s1 + $0x5e0] sm:$0xf] }
  0x94   : > { %2163 = vmatpush.bf16.msrb.mxu2 %v3041_v38  ;;  %v2925_v38 = vor.u32 %v3868_v24, %v2922_v25  ;;  %v3665_v45 = vor.u32 %v4057_v39, %v3664_v36  ;;  %v4030_v24 = vld [vmem:[%s6156_s1 + $0x72c] sm:$0xf]  ;;  %v3570_v25 = vld [vmem:[%s6156_s1 + $0x740] sm:$0xf0]  ;;  %v3928_v36 = vld [vmem:[%s6156_s1 + $0x3fc] sm:$0xf] }
  0x95   : > { %2176 = vmatpush.bf16.msrb.mxu3 %v3233_v41  ;;  %2138 = vmatmul.bf16.vlgmr.msrb.gmra.mxu0 %v4604_v29  ;;  %v2706_v41 = vld [vmem:[%s6156_s1 + $0x80] sm:$0xf0]  ;;  %v3976_v39 = vld [vmem:[%s6156_s1 + $0x57c] sm:$0xf] }
  0x96   : > { %2182 = vmatpush.bf16.msra.mxu0 %v3593_v42  ;;  %2151 = vmatmul.bf16.vlgmr.msrb.gmra.mxu1 %v4618_v37  ;;  %v3862_v42 = vld [vmem:[%s6156_s1 + $0x1ec] sm:$0xf]  ;;  %v2709_v46 = vor.u32 %v3814_v40, %v2706_v41  ;;  %v3354_v41 = vld [vmem:[%s6156_s1 + $0x590] sm:$0xf0] }
  0x97   : > { %2195 = vmatpush.bf16.msra.mxu1 %v3785_v43  ;;  %2164 = vmatmul.bf16.vlgmr.msrb.gmra.mxu2 %v4602_v28  ;;  %v2898_v43 = vld [vmem:[%s6156_s1 + $0x200] sm:$0xf0] }
  0x98   : > { %2208 = vmatpush.bf16.msra.mxu2 %v2829_v44  ;;  %2177 = vmatmul.bf16.vlgmr.msrb.gmra.mxu3 %v4606_v30  ;;  %v3473_v44 = vor.u32 %v4009_v35, %v3472_v33  ;;  %v2901_v50 = vor.u32 %v3862_v42, %v2898_v43  ;;  %v3381_v33 = vor.u32 %v3982_v21, %v3378_v23  ;;  %v4024_v42 = vld [vmem:[%s6156_s1 + $0x6fc] sm:$0xf]  ;;  %v3546_v43 = vld [vmem:[%s6156_s1 + $0x710] sm:$0xf0] }
  0x99   : > { %2221 = vmatpush.bf16.msra.mxu3 %v3021_v48  ;;  %v4003_v48 = vld [vmem:[%s6156_s1 + $0x64c] sm:$0xf0]  ;;  %v3573_v35 = vor.u32 %v4030_v24, %v3570_v25  ;;  %v3066_v23 = vld [vmem:[%s6156_s1 + $0x350] sm:$0xf0]  ;;  %v3952_v24 = vld [vmem:[%s6156_s1 + $0x4bc] sm:$0xf] }
  0x9a   : > { %2183 = vmatpush.bf16.msra.mxu0 %v3569_v54  ;;  %v3856_v54 = vld [vmem:[%s6156_s1 + $0x1bc] sm:$0xf] }
  0x9b   : > { %2196 = vmatpush.bf16.msra.mxu1 %v3761_v55  ;;  %v2874_v55 = vld [vmem:[%s6156_s1 + $0x1d0] sm:$0xf0] }
  0x9c   : > { %2209 = vmatpush.bf16.msra.mxu2 %v2805_v56  ;;  %v3449_v56 = vor.u32 %v4003_v48, %v3448_v47  ;;  %v2877_v0 = vor.u32 %v3856_v54, %v2874_v55  ;;  %v3357_v47 = vor.u32 %v3976_v39, %v3354_v41  ;;  %v3549_v48 = vor.u32 %v4024_v42, %v3546_v43  ;;  %v4018_v54 = vld [vmem:[%s6156_s1 + $0x6cc] sm:$0xf]  ;;  %v3522_v55 = vld [vmem:[%s6156_s1 + $0x6e0] sm:$0xf0] }
  0x9d   : > { %2222 = vmatpush.bf16.msra.mxu3 %v2997_v60  ;;  %v2685_v60 = vor.u32 %v3808_v52, %v2682_v53  ;;  %v3330_v53 = vld [vmem:[%s6156_s1 + $0x560] sm:$0xf0]  ;;  %v3898_v39 = vld [vmem:[%s6156_s1 + $0x30c] sm:$0xf] }
  0x9e   : > { %2184 = vmatpush.bf16.msra.mxu0 %v3545_v2  ;;  %v3850_v2 = vld [vmem:[%s6156_s1 + $0x18c] sm:$0xf] }
  0x9f   : > { %2197 = vmatpush.bf16.msra.mxu1 %v3737_v3  ;;  %v2850_v3 = vld [vmem:[%s6156_s1 + $0x1a0] sm:$0xf0] }
  0xa0   : > { %2210 = vmatpush.bf16.msra.mxu2 %v2781_v4  ;;  %v3940_v4 = vld [vmem:[%s6156_s1 + $0x45c] sm:$0xf] }
  0xa1   : > { %2223 = vmatpush.bf16.msra.mxu3 %v2973_v8  ;;  %v3402_v8 = vld [vmem:[%s6156_s1 + $0x5f0] sm:$0xf0] }
  0xa2   : > { %2185 = vmatpush.bf16.msra.mxu0 %v3521_v14  ;;  %v3786_v14 = vld [vmem:[%s6156_s1 + $0x8f0] sm:$0xf0]  ;;  %v3405_v17 = vor.u32 %v3988_v6, %v3402_v8  ;;  %v3117_v6 = vor.u32 %v3916_v61, %v3114_v62  ;;  %v3090_v8 = vld [vmem:[%s6156_s1 + $0x380] sm:$0xf0] }
  0xa3   : > { %2198 = vmatpush.bf16.msra.mxu1 %v3713_v15  ;;  %v2853_v15 = vor.u32 %v3850_v2, %v2850_v3  ;;  %v3789_v22 = vor.u32 %v4084_v13, %v3786_v14  ;;  %v4012_v2 = vld [vmem:[%s6156_s1 + $0x69c] sm:$0xf]  ;;  %v3498_v3 = vld [vmem:[%s6156_s1 + $0x6b0] sm:$0xf0]  ;;  %v4006_v13 = vld [vmem:[%s6156_s1 + $0x66c] sm:$0xf] }
  0xa4   : > { %2211 = vmatpush.bf16.msra.mxu2 %v2757_v16  ;;  %v3213_v16 = vor.u32 %v3940_v4, %v3210_v5  ;;  %v4060_v4 = vld [vmem:[%s6156_s1 + $0x81c] sm:$0xf]  ;;  %v3690_v5 = vld [vmem:[%s6156_s1 + $0x830] sm:$0xf0]  ;;  %v3501_v10 = vor.u32 %v4012_v2, %v3498_v3 }
  0xa5   : > { %2224 = vmatpush.bf16.msra.mxu3 %v2949_v20  ;;  %v3186_v20 = vld [vmem:[%s6156_s1 + $0x440] sm:$0xf0]  ;;  %v3693_v14 = vor.u32 %v4060_v4, %v3690_v5 }
  0xa6   : > { %2186 = vmatpush.bf16.msra.mxu0 %v3497_v26  ;;  %v4078_v26 = vld [vmem:[%s6156_s1 + $0x8ac] sm:$0xf] }
  0xa7   : > { %2199 = vmatpush.bf16.msra.mxu1 %v3689_v27  ;;  %v3762_v27 = vld [vmem:[%s6156_s1 + $0x8c0] sm:$0xf0] }
  0xa8   : > { %2212 = vmatpush.bf16.msra.mxu2 %v2733_v32  ;;  %v3189_v32 = vor.u32 %v3934_v19, %v3186_v20  ;;  %v3765_v40 = vor.u32 %v4078_v26, %v3762_v27  ;;  %v3904_v20 = vld [vmem:[%s6156_s1 + $0x33c] sm:$0xf]  ;;  %v3258_v27 = vld [vmem:[%s6156_s1 + $0x4d0] sm:$0xf0] }
  0xa9   : > { %2225 = vmatpush.bf16.msra.mxu3 %v2925_v38  ;;  %v3162_v38 = vld [vmem:[%s6156_s1 + $0x410] sm:$0xf0]  ;;  %v3261_v42 = vor.u32 %v3952_v24, %v3258_v27  ;;  %v2784_v24 = vld [vmem:[%s6156_s1 + $0x100] sm:$0xf] }
  0xaa   : > { %2187 = vmatpush.bf16.msra.mxu0 %v3473_v44  ;;  %v4072_v44 = vld [vmem:[%s6156_s1 + $0x87c] sm:$0xf] }
  0xab   : > { %2200 = vmatpush.bf16.msra.mxu1 %v3665_v45  ;;  %v3738_v45 = vld [vmem:[%s6156_s1 + $0x890] sm:$0xf0] }
  0xac   : > { %2213 = vmatpush.bf16.msra.mxu2 %v2709_v46  ;;  %v3165_v46 = vor.u32 %v3928_v36, %v3162_v38  ;;  %v3741_v52 = vor.u32 %v4072_v44, %v3738_v45  ;;  %v3642_v36 = vld [vmem:[%s6156_s1 + $0x7d0] sm:$0xf0]  ;;  %v3069_v38 = vor.u32 %v3904_v20, %v3066_v23  ;;  %v3946_v44 = vld [vmem:[%s6156_s1 + $0x48c] sm:$0xf]  ;;  %v3234_v45 = vld [vmem:[%s6156_s1 + $0x4a0] sm:$0xf0] }
  0xad   : > { %2226 = vmatpush.bf16.msra.mxu3 %v2901_v50  ;;  %v3138_v50 = vld [vmem:[%s6156_s1 + $0x3e0] sm:$0xf0]  ;;  %v3237_v61 = vor.u32 %v3946_v44, %v3234_v45  ;;  %v2760_v44 = vld [vmem:[%s6156_s1 + $0xd0] sm:$0xf]  ;;  %v3830_v45 = vld [vmem:[%s6156_s1 + $0xe4] sm:$0xf0] }
  0xae   : > { %2188 = vmatpush.bf16.msra.mxu0 %v3449_v56  ;;  %v4066_v56 = vld [vmem:[%s6156_s1 + $0x84c] sm:$0xf]  ;;  %v3141_v58 = vor.u32 %v3922_v49, %v3138_v50  ;;  %v3426_v50 = vld [vmem:[%s6156_s1 + $0x620] sm:$0xf0] }
  0xaf   : > { %2201 = vmatpush.bf16.msra.mxu1 %v3641_v59  ;;  %v3333_v59 = vor.u32 %v3970_v51, %v3330_v53  ;;  %v4042_v51 = vld [vmem:[%s6156_s1 + $0x78c] sm:$0xf]  ;;  %v2832_v53 = vld [vmem:[%s6156_s1 + $0x160] sm:$0xf] }
  0xb0   : > { %2214 = vmatpush.bf16.msra.mxu2 %v2685_v60  ;;  %v3525_v60 = vor.u32 %v4018_v54, %v3522_v55  ;;  %v3848_v54 = vld [vmem:[%s6156_s1 + $0x174] sm:$0xf0]  ;;  %v3024_v55 = vld [vmem:[%s6156_s1 + $0x2e0] sm:$0xf] }
  0xb1   : > { %2227 = vmatpush.bf16.msra.mxu3 %v2877_v0  ;;  %v3717_v0 = vor.u32 %v4066_v56, %v3714_v57  ;;  %v2833_v3 = vor.u32 %v3848_v54, %v2832_v53  ;;  %v2761_v54 = vor.u32 %v3830_v45, %v2760_v44  ;;  %v3956_v44 = vld [vmem:[%s6156_s1 + $0x4d4] sm:$0xf0] }
  0xb2   : > { %2189 = vmatpush.bf16.msra.mxu0 %v3425_v7  ;;  %v3910_v7 = vld [vmem:[%s6156_s1 + $0x36c] sm:$0xf] }
  0xb3   : > { %2202 = vmatpush.bf16.msra.mxu1 %v3617_v11  ;;  %v3958_v11 = vld [vmem:[%s6156_s1 + $0x4ec] sm:$0xf]  ;;  %v3093_v19 = vor.u32 %v3910_v7, %v3090_v8  ;;  %v2808_v8 = vld [vmem:[%s6156_s1 + $0x130] sm:$0xf] }
  0xb4   : > { %2215 = vmatpush.bf16.msra.mxu2 %v2661_v12  ;;  %v3282_v12 = vld [vmem:[%s6156_s1 + $0x500] sm:$0xf0] }
  0xb5   : > { %2228 = vmatpush.bf16.msra.mxu3 %v2853_v15  ;;  %2190 = vmatmul.bf16.vlgmr.msra.gmra.mxu0 %v4731_v31  ;;  %v3474_v15 = vld [vmem:[%s6156_s1 + $0x680] sm:$0xf0]  ;;  %v3285_v21 = vor.u32 %v3958_v11, %v3282_v12  ;;  %v3890_v12 = vld [vmem:[%s6156_s1 + $0x2c4] sm:$0xf0] }
  0xb6   : > { %2234 = vmatpush.bf16.msrb.mxu0 %v3213_v16  ;;  %2203 = vmatmul.bf16.vlgmr.msra.gmra.mxu1 %v4739_v34  ;;  %v5426_v16 = vld [vmem:[%s6158_s3] ss:$4 sm:$0x3f] }
  0xb7   : > { %2247 = vmatpush.bf16.msrb.mxu1 %v3405_v17  ;;  %2216 = vmatmul.bf16.vlgmr.msra.gmra.mxu2 %v4604_v29  ;;  %v4054_v17 = vld [vmem:[%s6156_s1 + $0x7ec] sm:$0xf]  ;;  %v522_v25 = vperm.slane %v5426_v16, 0 }
  0xb8   : > { %2260 = vmatpush.bf16.msrb.mxu2 %v3597_v18  ;;  %2229 = vmatmul.bf16.vlgmr.msra.gmra.mxu3 %v4618_v37  ;;  %v3666_v18 = vld [vmem:[%s6156_s1 + $0x800] sm:$0xf0]  ;;  %v1983_v41 = vpop.f32.mrf.mxu0 }
  0xb9   : > { %2273 = vmatpush.bf16.msrb.mxu3 %v3789_v22  ;;  %v3477_v22 = vor.u32 %v4006_v13, %v3474_v15  ;;  %v3669_v26 = vor.u32 %v4054_v17, %v3666_v18  ;;  %v3192_v13 = vld [vmem:[%s6156_s1 + $0x430] sm:$0xf] }
  0xba   : > { %2235 = vmatpush.bf16.msrb.mxu0 %v3189_v32  ;;  %v4000_v32 = vld [vmem:[%s6156_s1 + $0x63c] sm:$0xf]  ;;  %v3384_v18 = vld [vmem:[%s6156_s1 + $0x5b0] sm:$0xf] }
  0xbb   : > { %2248 = vmatpush.bf16.msrb.mxu1 %v3381_v33  ;;  %v3450_v33 = vld [vmem:[%s6156_s1 + $0x650] sm:$0xf0] }
  0xbc   : > { %2261 = vmatpush.bf16.msrb.mxu2 %v3573_v35  ;;  %v4048_v35 = vld [vmem:[%s6156_s1 + $0x7bc] sm:$0xf]  ;;  %v3453_v43 = vor.u32 %v4000_v32, %v3450_v33  ;;  %v3884_v32 = vld [vmem:[%s6156_s1 + $0x294] sm:$0xf0]  ;;  %v3168_v33 = vld [vmem:[%s6156_s1 + $0x400] sm:$0xf] }
  0xbd   : > { %2274 = vmatpush.bf16.msrb.mxu3 %v3765_v40  ;;  %v3042_v40 = vld [vmem:[%s6156_s1 + $0x320] sm:$0xf0]  ;;  %v3645_v49 = vor.u32 %v4048_v35, %v3642_v36  ;;  %v2009_v1 = vpop.f32.mrf.mxu2  ;;  %v3932_v35 = vld [vmem:[%s6156_s1 + $0x414] sm:$0xf0]  ;;  %v3360_v36 = vld [vmem:[%s6156_s1 + $0x580] sm:$0xf] }
  0xbe   : > { %2236 = vmatpush.bf16.msrb.mxu0 %v3165_v46  ;;  %v3994_v46 = vld [vmem:[%s6156_s1 + $0x60c] sm:$0xf]  ;;  %v3045_v57 = vor.u32 %v3898_v39, %v3042_v40 }
  0xbf   : > { %2249 = vmatpush.bf16.msrb.mxu1 %v3357_v47  ;;  %v1984_v47 = vadd.f32 %v1983_v41, %v522_v25  ;;  %v3429_v62 = vor.u32 %v3994_v46, %v3426_v50  ;;  %v2022_v5 = vpop.f32.mrf.mxu3  ;;  %v3836_v25 = vld [vmem:[%s6156_s1 + $0x114] sm:$0xf0]  ;;  %v2952_v46 = vld [vmem:[%s6156_s1 + $0x250] sm:$0xf]  ;;  %v3926_v50 = vld [vmem:[%s6156_s1 + $0x3e4] sm:$0xf0] }
  0xc0   : > { %2262 = vmatpush.bf16.msrb.mxu2 %v3549_v48  ;;  %v1996_v48 = vpop.f32.mrf.mxu1  ;;  %v1985_v17 = vpop.f32.mrf.mxu0  ;;  %v2785_v40 = vor.u32 %v3836_v25, %v2784_v24 }
  0xc1   : > { %2275 = vmatpush.bf16.msrb.mxu3 %v3741_v52  ;;  %v3618_v52 = vld [vmem:[%s6156_s1 + $0x7a0] sm:$0xf0]  ;;  %v1997_v56 = vadd.f32 %v1996_v48, %v1984_v47  ;;  %v3878_v48 = vld [vmem:[%s6156_s1 + $0x264] sm:$0xf0]  ;;  %v3096_v17 = vld [vmem:[%s6156_s1 + $0x370] sm:$0xf] }
  0xc2   : > { %2237 = vmatpush.bf16.msrb.mxu0 %v3141_v58  ;;  %v3896_v58 = vld [vmem:[%s6156_s1 + $0x2f4] sm:$0xf0]  ;;  %v3621_v2 = vor.u32 %v4042_v51, %v3618_v52  ;;  %v3336_v51 = vld [vmem:[%s6156_s1 + $0x550] sm:$0xf]  ;;  %v3974_v52 = vld [vmem:[%s6156_s1 + $0x564] sm:$0xf0] }
  0xc3   : > { %2250 = vmatpush.bf16.msrb.mxu1 %v3333_v59  ;;  %v3216_v59 = vld [vmem:[%s6156_s1 + $0x460] sm:$0xf]  ;;  %v2010_v4 = vadd.f32 %v2009_v1, %v1997_v56 }
  0xc4   : > { %2263 = vmatpush.bf16.msrb.mxu2 %v3525_v60  ;;  %v3944_v60 = vld [vmem:[%s6156_s1 + $0x474] sm:$0xf0]  ;;  %v3120_v1 = vld [vmem:[%s6156_s1 + $0x3a0] sm:$0xf] }
  0xc5   : > { %2276 = vmatpush.bf16.msrb.mxu3 %v3717_v0  ;;  %v3992_v0 = vld [vmem:[%s6156_s1 + $0x5f4] sm:$0xf0]  ;;  %v3217_v7 = vor.u32 %v3944_v60, %v3216_v59  ;;  %v2023_v15 = vadd.f32 %v2022_v5, %v2010_v4  ;;  %v2011_v39 = vpop.f32.mrf.mxu2  ;;  %v3312_v4 = vld [vmem:[%s6156_s1 + $0x520] sm:$0xf] }
  0xc6   : > { %2238 = vmatpush.bf16.msrb.mxu0 %v3117_v6  ;;  %v3025_v6 = vor.u32 %v3896_v58, %v3024_v55  ;;  %v3409_v11 = vor.u32 %v3992_v0, %v3408_v63  ;;  %v2736_v55 = vld [vmem:[%s6156_s1 + $0xa0] sm:$0xf]  ;;  %v2953_v58 = vor.u32 %v3878_v48, %v2952_v46  ;;  %v3824_v60 = vld [vmem:[%s6156_s1 + $0xb4] sm:$0xf0]  ;;  %v3337_v63 = vor.u32 %v3974_v52, %v3336_v51  ;;  %v2664_v46 = vld [vmem:[%s6156_s1 + $0x10] sm:$0xf] }
  0xc7   : > { %2251 = vmatpush.bf16.msrb.mxu1 %v3309_v9  ;;  %v3842_v9 = vld [vmem:[%s6156_s1 + $0x144] sm:$0xf0]  ;;  %v2024_v41 = vpop.f32.mrf.mxu3  ;;  %v3872_v0 = vld [vmem:[%s6156_s1 + $0x234] sm:$0xf0]  ;;  %v3048_v52 = vld [vmem:[%s6156_s1 + $0x310] sm:$0xf] }
  0xc8   : > { %2264 = vmatpush.bf16.msrb.mxu2 %v3501_v10  ;;  %v3000_v10 = vld [vmem:[%s6156_s1 + $0x2b0] sm:$0xf]  ;;  %v1998_v20 = vpop.f32.mrf.mxu1  ;;  %v3968_v5 = vld [vmem:[%s6156_s1 + $0x534] sm:$0xf0]  ;;  %v3072_v41 = vld [vmem:[%s6156_s1 + $0x340] sm:$0xf] }
  0xc9   : > { %2277 = vmatpush.bf16.msrb.mxu3 %v3693_v14  ;;  %v3938_v14 = vld [vmem:[%s6156_s1 + $0x444] sm:$0xf0]  ;;  %v3288_v20 = vld [vmem:[%s6156_s1 + $0x4f0] sm:$0xf] }
  0xca   : > { %2239 = vmatpush.bf16.msrb.mxu0 %v3093_v19  ;;  %v3986_v19 = vld [vmem:[%s6156_s1 + $0x5c4] sm:$0xf0]  ;;  %v3193_v23 = vor.u32 %v3938_v14, %v3192_v13  ;;  %v2904_v13 = vld [vmem:[%s6156_s1 + $0x1f0] sm:$0xf]  ;;  %v3313_v14 = vor.u32 %v3968_v5, %v3312_v4  ;;  %v3893_v4 = vld [vmem:[%s6156_s1 + $0x2e4] sm:$0xf] }
  0xcb   : > { %2252 = vmatpush.bf16.msrb.mxu1 %v3285_v21  ;;  %v2809_v21 = vor.u32 %v3842_v9, %v2808_v8  ;;  %v3385_v27 = vor.u32 %v3986_v19, %v3384_v18  ;;  %v3914_v18 = vld [vmem:[%s6156_s1 + $0x384] sm:$0xf0]  ;;  %v3026_v5 = vld [vmem:[%s6156_s1 + $0x2f8] sm:$0xf0] }
  0xcc   : > { %2265 = vmatpush.bf16.msrb.mxu2 %v3477_v22  ;;  %v3001_v22 = vor.u32 %v3890_v12, %v3000_v10  ;;  %v3818_v12 = vld [vmem:[%s6156_s1 + $0x84] sm:$0xf0] }
  0xcd   : > { %2278 = vmatpush.bf16.msrb.mxu3 %v3669_v26  ;;  %v2976_v26 = vld [vmem:[%s6156_s1 + $0x280] sm:$0xf]  ;;  %v3854_v51 = vld [vmem:[%s6156_s1 + $0x1a4] sm:$0xf0] }
  0xce   : > { %2240 = vmatpush.bf16.msrb.mxu0 %v3069_v38  ;;  %v3980_v38 = vld [vmem:[%s6156_s1 + $0x594] sm:$0xf0] }
  0xcf   : > { %2253 = vmatpush.bf16.msrb.mxu1 %v3261_v42  ;;  %v2977_v42 = vor.u32 %v3884_v32, %v2976_v26  ;;  %v3361_v47 = vor.u32 %v3980_v38, %v3360_v36  ;;  %v3097_v32 = vor.u32 %v3914_v18, %v3096_v17  ;;  %v2880_v36 = vld [vmem:[%s6156_s1 + $0x1c0] sm:$0xf]  ;;  %v3839_v17 = vld [vmem:[%s6156_s1 + $0x134] sm:$0xf]  ;;  %v2810_v18 = vld [vmem:[%s6156_s1 + $0x148] sm:$0xf0] }
  0xd0   : > { %2266 = vmatpush.bf16.msrb.mxu2 %v3453_v43  ;;  %v3169_v43 = vor.u32 %v3932_v35, %v3168_v33  ;;  %v2688_v33 = vld [vmem:[%s6156_s1 + $0x40] sm:$0xf]  ;;  %v3812_v35 = vld [vmem:[%s6156_s1 + $0x54] sm:$0xf0] }
  0xd1   : > { %2279 = vmatpush.bf16.msrb.mxu3 %v3645_v49  ;;  %v3144_v49 = vld [vmem:[%s6156_s1 + $0x3d0] sm:$0xf]  ;;  %v2689_v45 = vor.u32 %v3812_v35, %v2688_v33  ;;  %v3833_v33 = vld [vmem:[%s6156_s1 + $0x104] sm:$0xf]  ;;  %v2786_v35 = vld [vmem:[%s6156_s1 + $0x118] sm:$0xf0] }
  0xd2   : > { %2241 = vmatpush.bf16.msrb.mxu0 %v3045_v57  ;;  %v2035_v53 = vpop.f32.mrf.mxu0  ;;  %v3145_v59 = vor.u32 %v3926_v50, %v3144_v49  ;;  %v2856_v50 = vld [vmem:[%s6156_s1 + $0x190] sm:$0xf] }
  0xd3   : > { %2254 = vmatpush.bf16.msrb.mxu1 %v3237_v61  ;;  %v2036_v56 = vadd.f32 %v2035_v53, %v2023_v15  ;;  %v2048_v57 = vpop.f32.mrf.mxu1  ;;  %v2928_v61 = vld [vmem:[%s6156_s1 + $0x220] sm:$0xf]  ;;  %v3866_v15 = vld [vmem:[%s6156_s1 + $0x204] sm:$0xf0] }
  0xd4   : > { %2267 = vmatpush.bf16.msrb.mxu2 %v3429_v62  ;;  %v2442_v62 = vld [vmem:[%s5582_s9] sm:$0xff]  ;;  %v2929_v9 = vor.u32 %v3872_v0, %v2928_v61 }
  0xd5   : > { %2280 = vmatpush.bf16.msrb.mxu3 %v3621_v2  ;;  %2242 = vmatmul.bf16.vlgmr.msrb.gmra.mxu0 %v4602_v28  ;;  %v3920_v2 = vld [vmem:[%s6156_s1 + $0x3b4] sm:$0xf0]  ;;  %v3845_v0 = vld [vmem:[%s6156_s1 + $0x164] sm:$0xf] }
  0xd6   : > { %2286 = vmatpush.bf16.msra.mxu0 %v2833_v3  ;;  %2255 = vmatmul.bf16.vlgmr.msrb.gmra.mxu1 %v4606_v30  ;;  %v2049_v3 = vadd.f32 %v2048_v57, %v2036_v56  ;;  %v3121_v10 = vor.u32 %v3920_v2, %v3120_v1  ;;  %v3950_v56 = vld [vmem:[%s6156_s1 + $0x4a4] sm:$0xf0]  ;;  %v2834_v1 = vld [vmem:[%s6156_s1 + $0x178] sm:$0xf0]  ;;  %v2857_v2 = vor.u32 %v3854_v51, %v2856_v50  ;;  %v3875_v50 = vld [vmem:[%s6156_s1 + $0x254] sm:$0xf] }
  0xd7   : > { %2299 = vmatpush.bf16.msra.mxu1 %v3025_v6  ;;  %2268 = vmatmul.bf16.vlgmr.msrb.gmra.mxu2 %v4731_v31  ;;  %v523_v6 = vperm.slane %v5426_v16, 1  ;;  %v2954_v51 = vld [vmem:[%s6156_s1 + $0x268] sm:$0xf0] }
  0xd8   : > { %2312 = vmatpush.bf16.msra.mxu2 %v3217_v7  ;;  %2281 = vmatmul.bf16.vlgmr.msrb.gmra.mxu3 %v4739_v34  ;;  %v2737_v7 = vor.u32 %v3824_v60, %v2736_v55  ;;  %v5616_v8 = vadd.f32 %v2442_v62, %v2049_v3  ;;  %v3240_v55 = vld [vmem:[%s6156_s1 + $0x490] sm:$0xf]  ;;  %v3792_v60 = vld [vmem:[%s6156_s1 + $0x8e0] sm:$0xf] }
  0xd9   : > { %2325 = vmatpush.bf16.msra.mxu3 %v3409_v11  ;;  %v2712_v11 = vld [vmem:[%s6156_s1 + $0x70] sm:$0xf] }
  0xda   : > { %2287 = vmatpush.bf16.msra.mxu0 %v2809_v21  ;;  %v2061_v19 = vpop.f32.mrf.mxu2  ;;  %v3962_v21 = vld [vmem:[%s6156_s1 + $0x504] sm:$0xf0]  ;;  %v2037_v24 = vpop.f32.mrf.mxu0  ;;  %v2713_v25 = vor.u32 %v3818_v12, %v2712_v11  ;;  %v3576_v11 = vld [vmem:[%s6156_s1 + $0x730] sm:$0xf] }
  0xdb   : > { %2300 = vmatpush.bf16.msra.mxu1 %v3001_v22  ;;  %v2062_v22 = vadd.f32 %v2061_v19, %v523_v6  ;;  %v2050_v26 = vpop.f32.mrf.mxu1  ;;  %v3289_v39 = vor.u32 %v3962_v21, %v3288_v20  ;;  %v3241_v6 = vor.u32 %v3950_v56, %v3240_v55  ;;  %v4034_v12 = vld [vmem:[%s6156_s1 + $0x744] sm:$0xf0]  ;;  %v3887_v19 = vld [vmem:[%s6156_s1 + $0x2b4] sm:$0xf]  ;;  %v3002_v20 = vld [vmem:[%s6156_s1 + $0x2c8] sm:$0xf0] }
  0xdc   : > { %2313 = vmatpush.bf16.msra.mxu2 %v3193_v23  ;;  %v2074_v23 = vpop.f32.mrf.mxu3  ;;  %v3577_v21 = vor.u32 %v4034_v12, %v3576_v11  ;;  %v3552_v24 = vld [vmem:[%s6156_s1 + $0x700] sm:$0xf] }
  0xdd   : > { %2326 = vmatpush.bf16.msra.mxu3 %v3385_v27  ;;  %v2905_v27 = vor.u32 %v3866_v15, %v2904_v13  ;;  %v5651_v38 = vadd.f32 %v2074_v23, %v2062_v22  ;;  %v3768_v13 = vld [vmem:[%s6156_s1 + $0x8b0] sm:$0xf]  ;;  %v4082_v15 = vld [vmem:[%s6156_s1 + $0x8c4] sm:$0xf0]  ;;  %v2813_v23 = vor.u32 %v3839_v17, %v2810_v18  ;;  %v3744_v26 = vld [vmem:[%s6156_s1 + $0x880] sm:$0xf] }
  0xde   : > { %2288 = vmatpush.bf16.msra.mxu0 %v2785_v40  ;;  %v3860_v40 = vld [vmem:[%s6156_s1 + $0x1d4] sm:$0xf0]  ;;  %v3769_v22 = vor.u32 %v4082_v15, %v3768_v13  ;;  %v3815_v15 = vld [vmem:[%s6156_s1 + $0x74] sm:$0xf]  ;;  %v2714_v17 = vld [vmem:[%s6156_s1 + $0x88] sm:$0xf0] }
  0xdf   : > { %2301 = vmatpush.bf16.msra.mxu1 %v2977_v42  ;;  %v3908_v42 = vld [vmem:[%s6156_s1 + $0x354] sm:$0xf0]  ;;  %v2881_v48 = vor.u32 %v3860_v40, %v2880_v36  ;;  %v3881_v36 = vld [vmem:[%s6156_s1 + $0x284] sm:$0xf]  ;;  %v2443_v18 = vld [vmem:[%s5582_s9 + $0x8] sm:$0xff] }
  0xe0   : > { %2314 = vmatpush.bf16.msra.mxu2 %v3169_v43  ;;  %v3264_v43 = vld [vmem:[%s6156_s1 + $0x4c0] sm:$0xf]  ;;  %v3073_v49 = vor.u32 %v3908_v42, %v3072_v41  ;;  %v2789_v42 = vor.u32 %v3833_v33, %v2786_v35 }
  0xe1   : > { %2327 = vmatpush.bf16.msra.mxu3 %v3361_v47  ;;  %v3806_v47 = vld [vmem:[%s6156_s1 + $0x24] sm:$0xf0]  ;;  %v3265_v53 = vor.u32 %v3956_v44, %v3264_v43  ;;  %v3528_v43 = vld [vmem:[%s6156_s1 + $0x6d0] sm:$0xf] }
  0xe2   : > { %2289 = vmatpush.bf16.msra.mxu0 %v2761_v54  ;;  %v3902_v54 = vld [vmem:[%s6156_s1 + $0x324] sm:$0xf0]  ;;  %v2063_v57 = vpop.f32.mrf.mxu2  ;;  %v2665_v62 = vor.u32 %v3806_v47, %v2664_v46 }
  0xe3   : > { %2302 = vmatpush.bf16.msra.mxu1 %v2953_v58  ;;  %v3600_v58 = vld [vmem:[%s6156_s1 + $0x760] sm:$0xf]  ;;  %v3049_v3 = vor.u32 %v3902_v54, %v3048_v52  ;;  %v4022_v44 = vld [vmem:[%s6156_s1 + $0x6e4] sm:$0xf0] }
  0xe4   : > { %2315 = vmatpush.bf16.msra.mxu2 %v3145_v59  ;;  %v4040_v59 = vld [vmem:[%s6156_s1 + $0x774] sm:$0xf0]  ;;  %v2076_v61 = vpop.f32.mrf.mxu3  ;;  %v4070_v47 = vld [vmem:[%s6156_s1 + $0x864] sm:$0xf0]  ;;  %v3529_v52 = vor.u32 %v4022_v44, %v3528_v43  ;;  %v2882_v43 = vld [vmem:[%s6156_s1 + $0x1d8] sm:$0xf0] }
  0xe5   : > { %2328 = vmatpush.bf16.msra.mxu3 %v3337_v63  ;;  %v4088_v63 = vld [vmem:[%s6156_s1 + $0x8f4] sm:$0xf0]  ;;  %v2957_v61 = vor.u32 %v3875_v50, %v2954_v51  ;;  %v4046_v50 = vld [vmem:[%s6156_s1 + $0x7a4] sm:$0xf0]  ;;  %v3803_v51 = vld [vmem:[%s6156_s1 + $0x14] sm:$0xf] }
  0xe6   : > { %2290 = vmatpush.bf16.msra.mxu0 %v2737_v7  ;;  %v3601_v7 = vor.u32 %v4040_v59, %v3600_v58  ;;  %v3504_v58 = vld [vmem:[%s6156_s1 + $0x6a0] sm:$0xf]  ;;  %v4016_v59 = vld [vmem:[%s6156_s1 + $0x6b4] sm:$0xf0] }
  0xe7   : > { %2303 = vmatpush.bf16.msra.mxu1 %v2929_v9  ;;  %v3793_v9 = vor.u32 %v4088_v63, %v3792_v60  ;;  %v3696_v60 = vld [vmem:[%s6156_s1 + $0x820] sm:$0xf]  ;;  %v2738_v63 = vld [vmem:[%s6156_s1 + $0xb8] sm:$0xf0] }
  0xe8   : > { %2316 = vmatpush.bf16.msra.mxu2 %v3121_v10  ;;  %v2837_v10 = vor.u32 %v3845_v0, %v2834_v1  ;;  %v3869_v1 = vld [vmem:[%s6156_s1 + $0x224] sm:$0xf] }
  0xe9   : > { %2329 = vmatpush.bf16.msra.mxu3 %v3313_v14  ;;  %v3029_v14 = vor.u32 %v3893_v4, %v3026_v5 }
  0xea   : > { %2291 = vmatpush.bf16.msra.mxu0 %v2713_v25  ;;  %v4028_v25 = vld [vmem:[%s6156_s1 + $0x714] sm:$0xf0] }
  0xeb   : > { %2304 = vmatpush.bf16.msra.mxu1 %v2905_v27  ;;  %v3005_v27 = vor.u32 %v3887_v19, %v3002_v20  ;;  %v3553_v40 = vor.u32 %v4028_v25, %v3552_v24  ;;  %v3863_v19 = vld [vmem:[%s6156_s1 + $0x1f4] sm:$0xf]  ;;  %v2906_v20 = vld [vmem:[%s6156_s1 + $0x208] sm:$0xf0]  ;;  %v2717_v25 = vor.u32 %v3815_v15, %v2714_v17 }
  0xec   : > { %2317 = vmatpush.bf16.msra.mxu2 %v3097_v32  ;;  %v4076_v32 = vld [vmem:[%s6156_s1 + $0x894] sm:$0xf0]  ;;  %v3578_v15 = vld [vmem:[%s6156_s1 + $0x748] sm:$0xf0]  ;;  %v4079_v17 = vld [vmem:[%s6156_s1 + $0x8b4] sm:$0xf] }
  0xed   : > { %2330 = vmatpush.bf16.msra.mxu3 %v3289_v39  ;;  %v2978_v39 = vld [vmem:[%s6156_s1 + $0x298] sm:$0xf0]  ;;  %v3745_v41 = vor.u32 %v4076_v32, %v3744_v26  ;;  %v3456_v26 = vld [vmem:[%s6156_s1 + $0x640] sm:$0xf] }
  0xee   : > { %2292 = vmatpush.bf16.msra.mxu0 %v2689_v45  ;;  %v3720_v45 = vld [vmem:[%s6156_s1 + $0x850] sm:$0xf]  ;;  %v2981_v46 = vor.u32 %v3881_v36, %v2978_v39  ;;  %v3648_v32 = vld [vmem:[%s6156_s1 + $0x7c0] sm:$0xf]  ;;  %v2909_v36 = vor.u32 %v3863_v19, %v2906_v20  ;;  %v4052_v39 = vld [vmem:[%s6156_s1 + $0x7d4] sm:$0xf0] }
  0xef   : > { %2305 = vmatpush.bf16.msra.mxu1 %v2881_v48  ;;  %v3827_v48 = vld [vmem:[%s6156_s1 + $0xd4] sm:$0xf]  ;;  %v3721_v54 = vor.u32 %v4070_v47, %v3720_v45  ;;  %v3432_v45 = vld [vmem:[%s6156_s1 + $0x610] sm:$0xf]  ;;  %v3649_v47 = vor.u32 %v4052_v39, %v3648_v32  ;;  %v3554_v32 = vld [vmem:[%s6156_s1 + $0x718] sm:$0xf0] }
  0xf0   : > { %2318 = vmatpush.bf16.msra.mxu2 %v3073_v49  ;;  %v2762_v49 = vld [vmem:[%s6156_s1 + $0xe8] sm:$0xf0] }
  0xf1   : > { %2331 = vmatpush.bf16.msra.mxu3 %v3265_v53  ;;  %v2765_v55 = vor.u32 %v3827_v48, %v2762_v49  ;;  %v3624_v49 = vld [vmem:[%s6156_s1 + $0x790] sm:$0xf] }
  0xf2   : > { %2293 = vmatpush.bf16.msra.mxu0 %v2665_v62  ;;  %v2087_v53 = vpop.f32.mrf.mxu0  ;;  %v4064_v62 = vld [vmem:[%s6156_s1 + $0x834] sm:$0xf0] }
  0xf3   : > { %2306 = vmatpush.bf16.msra.mxu1 %v2857_v2  ;;  %v2088_v56 = vadd.f32 %v2087_v53, %v5651_v38  ;;  %v2100_v57 = vpop.f32.mrf.mxu1  ;;  %v3821_v38 = vld [vmem:[%s6156_s1 + $0xa4] sm:$0xf]  ;;  %v2930_v2 = vld [vmem:[%s6156_s1 + $0x238] sm:$0xf0]  ;;  %v3697_v4 = vor.u32 %v4064_v62, %v3696_v60 }
  0xf4   : > { %2319 = vmatpush.bf16.msra.mxu2 %v3049_v3  ;;  %v3505_v3 = vor.u32 %v4016_v59, %v3504_v58  ;;  %v2741_v5 = vor.u32 %v3821_v38, %v2738_v63  ;;  %v2933_v11 = vor.u32 %v3869_v1, %v2930_v2  ;;  %v3941_v58 = vld [vmem:[%s6156_s1 + $0x464] sm:$0xf]  ;;  %v3218_v59 = vld [vmem:[%s6156_s1 + $0x478] sm:$0xf0] }
  0xf5   : > { %2332 = vmatpush.bf16.msra.mxu3 %v3241_v6  ;;  %2294 = vmatmul.bf16.vlgmr.msra.gmra.mxu0 %v4604_v29  ;;  %v2101_v0 = vadd.f32 %v2100_v57, %v2088_v56  ;;  %v2858_v56 = vld [vmem:[%s6156_s1 + $0x1a8] sm:$0xf0]  ;;  %v3989_v60 = vld [vmem:[%s6156_s1 + $0x5e4] sm:$0xf]  ;;  %v3410_v62 = vld [vmem:[%s6156_s1 + $0x5f8] sm:$0xf0] }
  0xf6   : > { %2338 = vmatpush.bf16.msrb.mxu0 %v3601_v7  ;;  %2307 = vmatmul.bf16.vlgmr.msra.gmra.mxu1 %v4618_v37  ;;  %v3480_v7 = vld [vmem:[%s6156_s1 + $0x670] sm:$0xf]  ;;  %v4037_v38 = vld [vmem:[%s6156_s1 + $0x764] sm:$0xf]  ;;  %v3602_v63 = vld [vmem:[%s6156_s1 + $0x778] sm:$0xf0] }
  0xf7   : > { %2351 = vmatpush.bf16.msrb.mxu1 %v3793_v9  ;;  %2320 = vmatmul.bf16.vlgmr.msra.gmra.mxu2 %v4602_v28  ;;  %v4010_v9 = vld [vmem:[%s6156_s1 + $0x684] sm:$0xf0]  ;;  %v4085_v2 = vld [vmem:[%s6156_s1 + $0x8e4] sm:$0xf] }
  0xf8   : > { %2364 = vmatpush.bf16.msrb.mxu2 %v2837_v10  ;;  %2333 = vmatmul.bf16.vlgmr.msra.gmra.mxu3 %v4606_v30  ;;  %v3672_v10 = vld [vmem:[%s6156_s1 + $0x7f0] sm:$0xf] }
  0xf9   : > { %2377 = vmatpush.bf16.msrb.mxu3 %v3029_v14  ;;  %v4058_v14 = vld [vmem:[%s6156_s1 + $0x804] sm:$0xf0] }
  0xfa   : > { %2339 = vmatpush.bf16.msrb.mxu0 %v3577_v21  ;;  %v2113_v6 = vpop.f32.mrf.mxu2  ;;  %v3673_v24 = vor.u32 %v4058_v14, %v3672_v10  ;;  %v3194_v10 = vld [vmem:[%s6156_s1 + $0x448] sm:$0xf0]  ;;  %v4031_v14 = vld [vmem:[%s6156_s1 + $0x734] sm:$0xf] }
  0xfb   : > { %2352 = vmatpush.bf16.msrb.mxu1 %v3769_v22  ;;  %v2114_v12 = vadd.f32 %v2113_v6, %v2101_v0  ;;  %v2126_v13 = vpop.f32.mrf.mxu3  ;;  %v3481_v22 = vor.u32 %v4010_v9, %v3480_v7  ;;  %v2102_v33 = vpop.f32.mrf.mxu1  ;;  %v3625_v0 = vor.u32 %v4046_v50, %v3624_v49  ;;  %v3413_v6 = vor.u32 %v3989_v60, %v3410_v62  ;;  %v3935_v9 = vld [vmem:[%s6156_s1 + $0x434] sm:$0xf]  ;;  %v3722_v49 = vld [vmem:[%s6156_s1 + $0x868] sm:$0xf0]  ;;  %v3314_v60 = vld [vmem:[%s6156_s1 + $0x538] sm:$0xf0] }
  0xfc   : > { %2365 = vmatpush.bf16.msrb.mxu2 %v2813_v23  ;;  %v2089_v23 = vpop.f32.mrf.mxu0  ;;  %v3605_v7 = vor.u32 %v4037_v38, %v3602_v63  ;;  %v3197_v19 = vor.u32 %v3935_v9, %v3194_v10  ;;  %v4073_v33 = vld [vmem:[%s6156_s1 + $0x884] sm:$0xf]  ;;  %v3506_v62 = vld [vmem:[%s6156_s1 + $0x6b8] sm:$0xf0]  ;;  %v3290_v9 = vld [vmem:[%s6156_s1 + $0x508] sm:$0xf0] }
  0xfd   : > { %2378 = vmatpush.bf16.msrb.mxu3 %v3005_v27  ;;  %v2127_v21 = vadd.f32 %v2126_v13, %v2114_v12  ;;  %v4004_v27 = vld [vmem:[%s6156_s1 + $0x654] sm:$0xf0]  ;;  %v3386_v13 = vld [vmem:[%s6156_s1 + $0x5c8] sm:$0xf0]  ;;  %v3170_v23 = vld [vmem:[%s6156_s1 + $0x418] sm:$0xf0] }
  0xfe   : > { %2340 = vmatpush.bf16.msrb.mxu0 %v3553_v40  ;;  %v3809_v40 = vld [vmem:[%s6156_s1 + $0x44] sm:$0xf]  ;;  %v3457_v44 = vor.u32 %v4004_v27, %v3456_v26  ;;  %v3362_v26 = vld [vmem:[%s6156_s1 + $0x598] sm:$0xf0]  ;;  %v4007_v10 = vld [vmem:[%s6156_s1 + $0x674] sm:$0xf] }
  0xff   : > { %2353 = vmatpush.bf16.msrb.mxu1 %v3745_v41  ;;  %v5851_v35 = vadd.f32 %v2443_v18, %v2127_v21  ;;  %v2690_v41 = vld [vmem:[%s6156_s1 + $0x58] sm:$0xf0]  ;;  %v3770_v18 = vld [vmem:[%s6156_s1 + $0x8c8] sm:$0xf0]  ;;  %v3581_v21 = vor.u32 %v4031_v14, %v3578_v15  ;;  %v4025_v27 = vld [vmem:[%s6156_s1 + $0x704] sm:$0xf] }
 0x100   : > { %2366 = vmatpush.bf16.msrb.mxu2 %v2789_v42  ;;  %v3857_v42 = vld [vmem:[%s6156_s1 + $0x1c4] sm:$0xf]  ;;  %v2693_v48 = vor.u32 %v3809_v40, %v2690_v41  ;;  %v524_v40 = vperm.slane %v5426_v16, 2  ;;  %v3674_v14 = vld [vmem:[%s6156_s1 + $0x808] sm:$0xf0] }
 0x101   : > { %2379 = vmatpush.bf16.msrb.mxu3 %v2981_v46  ;;  %v3998_v46 = vld [vmem:[%s6156_s1 + $0x624] sm:$0xf0]  ;;  %v2885_v53 = vor.u32 %v3857_v42, %v2882_v43  ;;  %v3557_v42 = vor.u32 %v4025_v27, %v3554_v32  ;;  %v3146_v43 = vld [vmem:[%s6156_s1 + $0x3e8] sm:$0xf0]  ;;  %v4061_v63 = vld [vmem:[%s6156_s1 + $0x824] sm:$0xf] }
 0x102   : > { %2341 = vmatpush.bf16.msrb.mxu0 %v3529_v52  ;;  %v2115_v52 = vpop.f32.mrf.mxu2  ;;  %v3266_v32 = vld [vmem:[%s6156_s1 + $0x4d8] sm:$0xf0] }
 0x103   : > { %2354 = vmatpush.bf16.msrb.mxu1 %v3721_v54  ;;  %v2666_v54 = vld [vmem:[%s6156_s1 + $0x28] sm:$0xf0]  ;;  %v2128_v57 = vpop.f32.mrf.mxu3 }
 0x104   : > { %2367 = vmatpush.bf16.msrb.mxu2 %v2765_v55  ;;  %v3851_v55 = vld [vmem:[%s6156_s1 + $0x194] sm:$0xf]  ;;  %v2669_v1 = vor.u32 %v3803_v51, %v2666_v54  ;;  %v3122_v57 = vld [vmem:[%s6156_s1 + $0x3b8] sm:$0xf0] }
 0x105   : > { %2380 = vmatpush.bf16.msrb.mxu3 %v2957_v61  ;;  %v3433_v61 = vor.u32 %v3998_v46, %v3432_v45  ;;  %v3338_v45 = vld [vmem:[%s6156_s1 + $0x568] sm:$0xf0]  ;;  %v4019_v46 = vld [vmem:[%s6156_s1 + $0x6d4] sm:$0xf] }
 0x106   : > { %2342 = vmatpush.bf16.msrb.mxu0 %v3505_v3  ;;  %v3794_v3 = vld [vmem:[%s6156_s1 + $0x8f8] sm:$0xf0] }
 0x107   : > { %2355 = vmatpush.bf16.msrb.mxu1 %v3697_v4  ;;  %v2861_v4 = vor.u32 %v3851_v55, %v2858_v56  ;;  %v3797_v12 = vor.u32 %v4085_v2, %v3794_v3  ;;  %v3917_v56 = vld [vmem:[%s6156_s1 + $0x3a4] sm:$0xf] }
 0x108   : > { %2368 = vmatpush.bf16.msrb.mxu2 %v2741_v5  ;;  %v3221_v5 = vor.u32 %v3941_v58, %v3218_v59  ;;  %v3965_v58 = vld [vmem:[%s6156_s1 + $0x524] sm:$0xf] }
 0x109   : > { %2381 = vmatpush.bf16.msrb.mxu3 %v2933_v11  ;;  %v3983_v11 = vld [vmem:[%s6156_s1 + $0x5b4] sm:$0xf]  ;;  %v3317_v2 = vor.u32 %v3965_v58, %v3314_v60 }
 0x10a   : > { %2343 = vmatpush.bf16.msrb.mxu0 %v3481_v22  ;;  %v3389_v20 = vor.u32 %v3983_v11, %v3386_v13  ;;  %v3929_v22 = vld [vmem:[%s6156_s1 + $0x404] sm:$0xf]  ;;  %v3482_v11 = vld [vmem:[%s6156_s1 + $0x688] sm:$0xf0]  ;;  %v4055_v13 = vld [vmem:[%s6156_s1 + $0x7f4] sm:$0xf] }
 0x10b   : > { %2356 = vmatpush.bf16.msrb.mxu1 %v3673_v24  ;;  %v3977_v24 = vld [vmem:[%s6156_s1 + $0x584] sm:$0xf]  ;;  %v3173_v39 = vor.u32 %v3929_v22, %v3170_v23  ;;  %v3485_v22 = vor.u32 %v4007_v10, %v3482_v11  ;;  %v3677_v27 = vor.u32 %v4055_v13, %v3674_v14  ;;  %v2444_v60 = vld [vmem:[%s5582_s9 + $0x10] sm:$0xff]  ;;  %v2445_v11 = vld [vmem:[%s5582_s9 + $0x18] sm:$0xff] }
 0x10c   : > { %2369 = vmatpush.bf16.msrb.mxu2 %v2717_v25  ;;  %v3773_v25 = vor.u32 %v4079_v17, %v3770_v18  ;;  %v3365_v41 = vor.u32 %v3977_v24, %v3362_v26  ;;  %v3905_v23 = vld [vmem:[%s6156_s1 + $0x344] sm:$0xf]  ;;  %v3074_v24 = vld [vmem:[%s6156_s1 + $0x358] sm:$0xf0] }
 0x10d   : > { %2382 = vmatpush.bf16.msrb.mxu3 %v2909_v36  ;;  %v3746_v36 = vld [vmem:[%s6156_s1 + $0x898] sm:$0xf0] }
 0x10e   : > { %2344 = vmatpush.bf16.msrb.mxu0 %v3457_v44  ;;  %v3971_v44 = vld [vmem:[%s6156_s1 + $0x554] sm:$0xf] }
 0x10f   : > { %2357 = vmatpush.bf16.msrb.mxu1 %v3649_v47  ;;  %v3530_v47 = vld [vmem:[%s6156_s1 + $0x6e8] sm:$0xf0]  ;;  %v3341_v54 = vor.u32 %v3971_v44, %v3338_v45 }
 0x110   : > { %2370 = vmatpush.bf16.msrb.mxu2 %v2693_v48  ;;  %v4067_v48 = vld [vmem:[%s6156_s1 + $0x854] sm:$0xf]  ;;  %v3533_v55 = vor.u32 %v4019_v46, %v3530_v47  ;;  %v3050_v44 = vld [vmem:[%s6156_s1 + $0x328] sm:$0xf0] }
 0x111   : > { %2383 = vmatpush.bf16.msrb.mxu3 %v2885_v53  ;;  %v3725_v59 = vor.u32 %v4067_v48, %v3722_v49  ;;  %v3242_v46 = vld [vmem:[%s6156_s1 + $0x4a8] sm:$0xf0]  ;;  %v3995_v47 = vld [vmem:[%s6156_s1 + $0x614] sm:$0xf] }
 0x112   : > { %2345 = vmatpush.bf16.msrb.mxu0 %v3433_v61  ;;  %v2139_v50 = vpop.f32.mrf.mxu0  ;;  %v4013_v61 = vld [vmem:[%s6156_s1 + $0x6a4] sm:$0xf]  ;;  %v3434_v48 = vld [vmem:[%s6156_s1 + $0x628] sm:$0xf0] }
 0x113   : > { %2358 = vmatpush.bf16.msrb.mxu1 %v3625_v0  ;;  %v2140_v52 = vadd.f32 %v2139_v50, %v524_v40  ;;  %v2152_v53 = vpop.f32.mrf.mxu1  ;;  %v3698_v0 = vld [vmem:[%s6156_s1 + $0x838] sm:$0xf0]  ;;  %v3509_v3 = vor.u32 %v4013_v61, %v3506_v62  ;;  %v4043_v50 = vld [vmem:[%s6156_s1 + $0x794] sm:$0xf]  ;;  %v525_v62 = vperm.slane %v5426_v16, 3 }
 0x114   : > { %2371 = vmatpush.bf16.msrb.mxu2 %v2669_v1  ;;  %v3125_v1 = vor.u32 %v3917_v56, %v3122_v57  ;;  %v3650_v40 = vld [vmem:[%s6156_s1 + $0x7d8] sm:$0xf0] }
 0x115   : > { %2384 = vmatpush.bf16.msrb.mxu3 %v2861_v4  ;;  %2346 = vmatmul.bf16.vlgmr.msrb.gmra.mxu0 %v4731_v31  ;;  %v2153_v38 = vadd.f32 %v2152_v53, %v2140_v52  ;;  %v3911_v4 = vld [vmem:[%s6156_s1 + $0x374] sm:$0xf] }
 0x116   : > { %2390 = vmatpush.bf16.msra.mxu0 %v3221_v5  ;;  %2359 = vmatmul.bf16.vlgmr.msrb.gmra.mxu1 %v4739_v34  ;;  %v3098_v5 = vld [vmem:[%s6156_s1 + $0x388] sm:$0xf0] }
 0x117   : > { %2403 = vmatpush.bf16.msra.mxu1 %v3413_v6  ;;  %2372 = vmatmul.bf16.vlgmr.msrb.gmra.mxu2 %v4604_v29  ;;  %v3923_v29 = vld [vmem:[%s6156_s1 + $0x3d4] sm:$0xf] }
 0x118   : > { %2416 = vmatpush.bf16.msra.mxu2 %v3605_v7  ;;  %2385 = vmatmul.bf16.vlgmr.msrb.gmra.mxu3 %v4618_v37  ;;  %v3749_v37 = vor.u32 %v4073_v33, %v3746_v36  ;;  %v3149_v51 = vor.u32 %v3923_v29, %v3146_v43  ;;  %v3959_v6 = vld [vmem:[%s6156_s1 + $0x4f4] sm:$0xf]  ;;  %v3701_v7 = vor.u32 %v4061_v63, %v3698_v0  ;;  %v4001_v33 = vld [vmem:[%s6156_s1 + $0x644] sm:$0xf]  ;;  %v3458_v36 = vld [vmem:[%s6156_s1 + $0x658] sm:$0xf0] }
 0x119   : > { %2429 = vmatpush.bf16.msra.mxu3 %v3797_v12  ;;  %v3461_v29 = vor.u32 %v4001_v33, %v3458_v36  ;;  %v3899_v43 = vld [vmem:[%s6156_s1 + $0x314] sm:$0xf] }
 0x11a   : > { %2391 = vmatpush.bf16.msra.mxu0 %v3197_v19  ;;  %v2165_v12 = vpop.f32.mrf.mxu2  ;;  %v2141_v15 = vpop.f32.mrf.mxu0  ;;  %v3101_v19 = vor.u32 %v3911_v4, %v3098_v5  ;;  %v3053_v53 = vor.u32 %v3899_v43, %v3050_v44 }
 0x11b   : > { %2404 = vmatpush.bf16.msra.mxu1 %v3389_v20  ;;  %v2166_v17 = vadd.f32 %v2165_v12, %v2153_v38  ;;  %v2178_v18 = vpop.f32.mrf.mxu3  ;;  %v2154_v20 = vpop.f32.mrf.mxu1 }
 0x11c   : > { %2417 = vmatpush.bf16.msra.mxu2 %v3581_v21  ;;  %v3293_v21 = vor.u32 %v3959_v6, %v3290_v9 }
 0x11d   : > { %2430 = vmatpush.bf16.msra.mxu3 %v3773_v25  ;;  %v3953_v25 = vld [vmem:[%s6156_s1 + $0x4c4] sm:$0xf]  ;;  %v2179_v26 = vadd.f32 %v2178_v18, %v2166_v17 }
 0x11e   : > { %2392 = vmatpush.bf16.msra.mxu0 %v3173_v39  ;;  %v4049_v39 = vld [vmem:[%s6156_s1 + $0x7c4] sm:$0xf] }
 0x11f   : > { %2405 = vmatpush.bf16.msra.mxu1 %v3365_v41  ;;  %v3077_v41 = vor.u32 %v3905_v23, %v3074_v24  ;;  %v3653_v45 = vor.u32 %v4049_v39, %v3650_v40  ;;  %v4136_v39 = vld [vmem:[%s6158_s3] ss:$4 sm:$0x3f] }
 0x120   : > { %2418 = vmatpush.bf16.msra.mxu2 %v3557_v42  ;;  %v3269_v42 = vor.u32 %v3953_v25, %v3266_v32  ;;  %v526_v40 = vperm.slane %v4136_v39, 4 }
 0x121   : > { %2431 = vmatpush.bf16.msra.mxu3 %v3749_v37  ;;  %v3947_v37 = vld [vmem:[%s6156_s1 + $0x494] sm:$0xf] }
 0x122   : > { %2393 = vmatpush.bf16.msra.mxu0 %v3149_v51  ;;  %v2167_v49 = vpop.f32.mrf.mxu2  ;;  %v3626_v51 = vld [vmem:[%s6156_s1 + $0x7a8] sm:$0xf0] }
 0x123   : > { %2406 = vmatpush.bf16.msra.mxu1 %v3341_v54  ;;  %v2180_v52 = vpop.f32.mrf.mxu3  ;;  %v3245_v54 = vor.u32 %v3947_v37, %v3242_v46  ;;  %v3629_v56 = vor.u32 %v4043_v50, %v3626_v51 }
 0x124   : > { %2419 = vmatpush.bf16.msra.mxu2 %v3533_v55  ;;  %v3437_v55 = vor.u32 %v3995_v47, %v3434_v48 }
 0x125   : > { %2432 = vmatpush.bf16.msra.mxu3 %v3725_v59 }
 0x126   : > { %2394 = vmatpush.bf16.msra.mxu0 %v3125_v1 }
 0x127   : > { %2407 = vmatpush.bf16.msra.mxu1 %v3317_v2 }
 0x128   : > { %2420 = vmatpush.bf16.msra.mxu2 %v3509_v3 }
 0x129   : > { %2433 = vmatpush.bf16.msra.mxu3 %v3701_v7 }
 0x12a   : > { %2395 = vmatpush.bf16.msra.mxu0 %v3101_v19 }
 0x12b   : > { %2408 = vmatpush.bf16.msra.mxu1 %v3293_v21 }
 0x12c   : > { %2421 = vmatpush.bf16.msra.mxu2 %v3485_v22 }
 0x12d   : > { %2434 = vmatpush.bf16.msra.mxu3 %v3677_v27 }
 0x12e   : > { %2396 = vmatpush.bf16.msra.mxu0 %v3077_v41 }
 0x12f   : > { %2409 = vmatpush.bf16.msra.mxu1 %v3269_v42 }
 0x130   : > { %2422 = vmatpush.bf16.msra.mxu2 %v3461_v29 }
 0x131   : > { %2435 = vmatpush.bf16.msra.mxu3 %v3653_v45  ;;  %v527_v45 = vperm.slane %v4136_v39, 5 }
 0x132   : > { %2397 = vmatpush.bf16.msra.mxu0 %v3053_v53  ;;  %v2191_v57 = vpop.f32.mrf.mxu0 }
 0x133   : > { %2410 = vmatpush.bf16.msra.mxu1 %v3245_v54  ;;  %v2192_v58 = vadd.f32 %v2191_v57, %v2179_v26  ;;  %v2204_v59 = vpop.f32.mrf.mxu1  ;;  %v2446_v54 = vld [vmem:[%s5582_s9 + $0x20] sm:$0xff] }
 0x134   : > { %2423 = vmatpush.bf16.msra.mxu2 %v3437_v55  ;;  %v2454_v55 = vadd.f32 %v5851_v35, %v5616_v8 }
 0x135   : > { %2436 = vmatpush.bf16.msra.mxu3 %v3629_v56  ;;  %2398 = vmatmul.bf16.vlgmr.msra.gmra.mxu0 %v4602_v28  ;;  %v2205_v61 = vadd.f32 %v2204_v59, %v2192_v58 }
 0x136   : > { %2411 = vmatmul.bf16.vlgmr.msra.gmra.mxu1 %v4606_v30 }
 0x137   : > { %2424 = vmatmul.bf16.vlgmr.msra.gmra.mxu2 %v4731_v31  ;;  %v6095_v38 = vadd.f32 %v2444_v60, %v2205_v61 }
 0x138   : > { %2437 = vmatmul.bf16.vlgmr.msra.gmra.mxu3 %v4739_v34 }
 0x139   : > { %v2455_v58 = vadd.f32 %v2454_v55, %v6095_v38 }
 0x13a   : > { %v2217_v63 = vpop.f32.mrf.mxu2  ;;  %v2193_v28 = vpop.f32.mrf.mxu0 }
 0x13b   : > { %v2218_v0 = vadd.f32 %v2217_v63, %v525_v62  ;;  %v2230_v1 = vpop.f32.mrf.mxu3  ;;  %v2206_v2 = vpop.f32.mrf.mxu1 }
 0x13d   : > { %v2231_v30 = vadd.f32 %v2230_v1, %v2218_v0  ;;  %v2447_v0 = vld [vmem:[%s5582_s9 + $0x28] sm:$0xff]  ;;  %s4157_s9 = scalar_lea.hbm %s6159_s4, 96 }
 0x13e   : > { %p4159_p1 = scmp.lt.s32.totalorder %s4157_s9, %s4153_s14 }
 0x140   : > { %p4160_p2 = por %p4159_p1, %p4158_p0 }
 0x142   : > { %v2219_v3 = vpop.f32.mrf.mxu2  ;;  %p4161_p3 = pnand %p4160_p2, %p4156_p13 }
 0x143   : > { %v2232_v31 = vpop.f32.mrf.mxu3 }
 0x152   : > { %v2243_v4 = vpop.f32.mrf.mxu0 }
 0x153   : > { %v2244_v34 = vadd.f32 %v2243_v4, %v2231_v30  ;;  %v2256_v5 = vpop.f32.mrf.mxu1 }
 0x155   : > { %v2257_v6 = vadd.f32 %v2256_v5, %v2244_v34  ;;  %v4201_v34 = vmov 768.0  }
 0x156   : > { %4132 = vrcp.f32 %v4201_v34 }
 0x15a   : > { %v2269_v7 = vpop.f32.mrf.mxu2  ;;  %v2245_v12 = vpop.f32.mrf.mxu0 }
 0x15b   : > { %v2270_v9 = vadd.f32 %v2269_v7, %v2257_v6  ;;  %v2282_v10 = vpop.f32.mrf.mxu3  ;;  %v2258_v13 = vpop.f32.mrf.mxu1 }
 0x15c   : > { %v4133_v5 = vpop.eup %4132 }
 0x15d   : > { %v2283_v16 = vadd.f32 %v2282_v10, %v2270_v9  ;;  %v2462_v6 = vmul.f32 768.0, %v4133_v5  ;;  %vm2466_vm0 = vweird.f32 %v4133_v5 }
 0x15f   : > { %v6098_v14 = vadd.f32 %v2445_v11, %v2283_v16  ;;  %v2463_v7 = vsub.f32 1.0, %v2462_v6 }
 0x161   : > { %v2456_v28 = vadd.f32 %v2455_v58, %v6098_v14  ;;  %v2464_v9 = vmul.f32 %v4133_v5, %v2463_v7 }
 0x162   : > { %v2271_v15 = vpop.f32.mrf.mxu2 }
 0x163   : > { %v2284_v17 = vpop.f32.mrf.mxu3  ;;  %v2465_v10 = vadd.f32 %v4133_v5, %v2464_v9 }
 0x165   : > { %v2467_v11 = vsel %vm2466_vm0, %v4133_v5, %v2465_v10 }
 0x172   : > { %v2295_v18 = vpop.f32.mrf.mxu0 }
 0x173   : > { %v2308_v19 = vpop.f32.mrf.mxu1  ;;  %v2296_v42 = vadd.f32 %v2295_v18, %v526_v40 }
 0x175   : > { %v2309_v44 = vadd.f32 %v2308_v19, %v2296_v42 }
 0x17a   : > { %v2321_v20 = vpop.f32.mrf.mxu2  ;;  %v2297_v21 = vpop.f32.mrf.mxu0 }
 0x17b   : > { %v2334_v22 = vpop.f32.mrf.mxu3  ;;  %v2310_v23 = vpop.f32.mrf.mxu1  ;;  %v2322_v37 = vadd.f32 %v2321_v20, %v2309_v44  ;;  %v2645_v44 = vld [vmem:[%s6158_s3 + $0x2] ss:$4 sm:$0x3f] }
 0x17d   : > { %v2335_v46 = vadd.f32 %v2334_v22, %v2322_v37 }
 0x182   : > { %v2323_v24 = vpop.f32.mrf.mxu2 }
 0x183   : > { %v2336_v25 = vpop.f32.mrf.mxu3 }
 0x192   : > { %v2347_v26 = vpop.f32.mrf.mxu0 }
 0x193   : > { %v2360_v27 = vpop.f32.mrf.mxu1  ;;  %v2348_v48 = vadd.f32 %v2347_v26, %v2335_v46 }
 0x195   : > { %v2361_v53 = vadd.f32 %v2360_v27, %v2348_v48 }
 0x197   : > { %v2452_v59 = vadd.f32 %v2446_v54, %v2361_v53  ;;  %v2527_v53 = vperm.slane %v2645_v44, 1  ;;  %v2528_v54 = vperm.slane %v2645_v44, 2 }
 0x199   : > { %v2457_v30 = vadd.f32 %v2456_v28, %v2452_v59 }
 0x19a   : > { %v2373_v32 = vpop.f32.mrf.mxu2  ;;  %v2349_v36 = vpop.f32.mrf.mxu0 }
 0x19b   : > { %v2386_v33 = vpop.f32.mrf.mxu3  ;;  %v2362_v41 = vpop.f32.mrf.mxu1  ;;  %v2374_v47 = vadd.f32 %v2373_v32, %v527_v45 }
 0x19d   : > { %v2387_v49 = vadd.f32 %v2386_v33, %v2374_v47 }
 0x1a2   : > { %v2375_v29 = vpop.f32.mrf.mxu2 }
 0x1a3   : > { %v2388_v43 = vpop.f32.mrf.mxu3  ;;  %v2644_v29 = vld [vmem:[%s6158_s3 + $0x1] ss:$4 sm:$0x3f] }
 0x1a4   : > { %v2507_v37 = vperm.slane %v2644_v29, 0  ;;  %v2508_v45 = vperm.slane %v2644_v29, 1  ;;  %v2509_v47 = vperm.slane %v2644_v29, 2  ;;  %v2510_v48 = vperm.slane %v2644_v29, 3 }
 0x1b2   : > { %v2399_v50 = vpop.f32.mrf.mxu0 }
 0x1b3   : > { %v2412_v51 = vpop.f32.mrf.mxu1  ;;  %v2400_v52 = vadd.f32 %v2399_v50, %v2387_v49  ;;  %v2511_v49 = vperm.slane %v2644_v29, 4  ;;  %v2512_v50 = vperm.slane %v2644_v29, 5 }
 0x1b5   : > { %v2413_v56 = vadd.f32 %v2412_v51, %v2400_v52  ;;  %v2526_v52 = vperm.slane %v2645_v44, 0 }
 0x1ba   : > { %v2425_v57 = vpop.f32.mrf.mxu2  ;;  %v2401_v62 = vpop.f32.mrf.mxu0 }
 0x1bb   : > { %v2426_v60 = vadd.f32 %v2425_v57, %v2413_v56  ;;  %v2438_v61 = vpop.f32.mrf.mxu3  ;;  %v2414_v63 = vpop.f32.mrf.mxu1  ;;  %v2530_v62 = vperm.slane %v2645_v44, 4 }
 0x1bd   : > { %v2439_v1 = vadd.f32 %v2438_v61, %v2426_v60  ;;  %v2529_v61 = vperm.slane %v2645_v44, 3 }
 0x1bf   : > { %v2453_v2 = vadd.f32 %v2447_v0, %v2439_v1 }
 0x1c1   : > { %v2458_v3 = vadd.f32 %v2457_v30, %v2453_v2 }
 0x1c2   : > { %v2427_v31 = vpop.f32.mrf.mxu2 }
 0x1c3   : > { %v2440_v4 = vpop.f32.mrf.mxu3  ;;  %2459 = vadd.xlane.f32.xlu0 %v2458_v3  ;;  %v2531_v3 = vperm.slane %v2645_v44, 5 }
 0x236   : > { %v2460_v16 = vpop.xlane.xlu0 %2459 }
 0x237   : > { %v2468_v12 = vmul.f32 %v2467_v11, %v2460_v16 }
 0x239   : > { %v2469_v13 = vsub.f32 %v5616_v8, %v2468_v12  ;;  %v2470_v15 = vsub.f32 %v5851_v35, %v2468_v12  ;;  %v2471_v17 = vsub.f32 %v6095_v38, %v2468_v12  ;;  %v2472_v18 = vsub.f32 %v6098_v14, %v2468_v12 }
 0x23a   : > { %v2473_v21 = vsub.f32 %v2452_v59, %v2468_v12  ;;  %v2474_v24 = vsub.f32 %v2453_v2, %v2468_v12 }
 0x23b   : > { %v2475_v19 = vmul.f32 %v2469_v13, %v2469_v13  ;;  %v2476_v20 = vmul.f32 %v2470_v15, %v2470_v15  ;;  %v2477_v22 = vmul.f32 %v2471_v17, %v2471_v17  ;;  %v2478_v25 = vmul.f32 %v2472_v18, %v2472_v18 }
 0x23c   : > { %v2479_v27 = vmul.f32 %v2473_v21, %v2473_v21  ;;  %v2480_v33 = vmul.f32 %v2474_v24, %v2474_v24 }
 0x23d   : > { %v2481_v23 = vadd.f32 %v2476_v20, %v2475_v19 }
 0x23f   : > { %v2482_v26 = vadd.f32 %v2481_v23, %v2477_v22 }
 0x241   : > { %v2483_v32 = vadd.f32 %v2482_v26, %v2478_v25 }
 0x243   : > { %v2484_v36 = vadd.f32 %v2483_v32, %v2479_v27 }
 0x245   : > { %v2485_v8 = vadd.f32 %v2484_v36, %v2480_v33 }
 0x247   : > { %2486 = vadd.xlane.f32.xlu0 %v2485_v8 }
 0x2ba   : > { %v2487_v35 = vpop.xlane.xlu0 %2486 }
 0x2bb   : > { %v2488_v39 = vmul.f32 %v2487_v35, %v2467_v11 }
 0x2bd   : > { %v2489_v38 = vadd.f32 1e-12, %v2488_v39 }
 0x2bf   : > { %4134 = vrsqrt.f32 %v2489_v38  ;;  %vm2496_vm2 = vweird.f32 %v2489_v38 }
 0x2c5   : > { %v4135_v14 = vpop.eup %4134 }
 0x2c6   : > { %v2491_v40 = vmul.f32 %v4135_v14, %v2489_v38  ;;  %vm2497_vm1 = vweird.f32 %v4135_v14 }
 0x2c7   : > { %vm2498_vm3 = vmor %vm2496_vm2, %vm2497_vm1 }
 0x2c8   : > { %v2492_v41 = vmul.f32 %v4135_v14, %v2491_v40 }
 0x2ca   : > { %v2493_v42 = vmul.f32 0.5, %v2492_v41 }
 0x2cc   : > { %v2494_v43 = vsub.f32 1.5, %v2493_v42 }
 0x2ce   : > { %v2495_v46 = vmul.f32 %v4135_v14, %v2494_v43 }
 0x2d0   : > { %v2499_v51 = vsel %vm2498_vm3, %v4135_v14, %v2495_v46 }
 0x2d1   : > { %v2500_v55 = vmul.f32 %v2499_v51, %v2469_v13  ;;  %v2501_v56 = vmul.f32 %v2499_v51, %v2470_v15  ;;  %v2502_v57 = vmul.f32 %v2499_v51, %v2471_v17  ;;  %v2503_v58 = vmul.f32 %v2499_v51, %v2472_v18 }
 0x2d2   : > { %v2504_v59 = vmul.f32 %v2499_v51, %v2473_v21  ;;  %v2505_v60 = vmul.f32 %v2499_v51, %v2474_v24 }
 0x2d3   : > { %v2519_v63 = vmul.f32 %v2507_v37, %v2500_v55  ;;  %v2520_v0 = vmul.f32 %v2508_v45, %v2501_v56  ;;  %v2521_v1 = vmul.f32 %v2509_v47, %v2502_v57  ;;  %v2522_v28 = vmul.f32 %v2510_v48, %v2503_v58 }
 0x2d4   : > { %v2523_v2 = vmul.f32 %v2511_v49, %v2504_v59  ;;  %v2524_v30 = vmul.f32 %v2512_v50, %v2505_v60 }
 0x2d5   : > { %v2538_v31 = vadd.f32 %v2526_v52, %v2519_v63  ;;  %v2539_v4 = vadd.f32 %v2527_v53, %v2520_v0  ;;  %v2540_v34 = vadd.f32 %v2528_v54, %v2521_v1  ;;  %v2541_v5 = vadd.f32 %v2529_v61, %v2522_v28 }
 0x2d6   : > { %v2542_v6 = vadd.f32 %v2530_v62, %v2523_v2  ;;  %v2543_v7 = vadd.f32 %v2531_v3, %v2524_v30 }
 0x2d7   : > { %2544 = vst [vmem:[%s205_s19] sm:$0xff] %v2538_v31 }
 0x2d8   : > { %2545 = vst [vmem:[%s205_s19 + $0x8] sm:$0xff] %v2539_v4 }
 0x2d9   : > { %2546 = vst [vmem:[%s205_s19 + $0x10] sm:$0xff] %v2540_v34 }
 0x2da   : > { %2547 = vst [vmem:[%s205_s19 + $0x18] sm:$0xff] %v2541_v5 }
 0x2db   : > { %2548 = vst [vmem:[%s205_s19 + $0x20] sm:$0xff] %v2542_v6 }
 0x2dc   : > { %2549 = vst [vmem:[%s205_s19 + $0x28] sm:$0xff] %v2543_v7 }
 0x2dd   : > { %4164 = shalt.err (!%p4161_p3)
}
 0x2de   : > { %4092 = dma.vmem_to_hbm [thread:$0]  (%p4265_p5), %s2565_s8, 768, %s2567_s12, %s2551_s13  }
 0x2df PF: > { %p4098_p4 = scmp.ge.s32.totalorder %s4199_s18, 2  ;;  %s2578_s11 = sand.u32 1, %s4187_s15  }
 0x2e0   : > { %s2579_s27 = scalar_lea.sflag [#allocation3], %s2578_s11 }
 0x2e1   : > { %p4095_p7 = pnand %p4098_p4, %p4269_p6 }
 0x2e3   : > { %p4096_p8 = pneg %p4095_p7 }
 0x2e5   : > { %4182 = dma.done.wait (%p4096_p8), %s2579_s27, 768  }
 0x2e6   : > { %4184 = vsyncadd (%p4096_p8), %s2579_s27, 4294966528  ;;  %p14_p9 = scmp.ge.s32.totalorder %s4252_s21, 4   ;;  %s6162_s15 = smov %s4191_s16 }
 0x2e7   : > { %s6163_s16 = smov %s4195_s17  ;;  %s6164_s17 = smov %s4263_s24 }
 0x2e8   : > { %s6165_s18 = smov %s4252_s21  ;;  %16 = sbr.rel (!%p14_p9) target bundleno = 3 (0x3), region = 76 }
 0x2ed   :  { %2585 = vsyncpa [#allocation3], 1 }
 0x2ee   :  { %2587 = vsyncpa [#allocation3 + $0x1], 1 }

</bundles_post_ra>
